<compile_context>
chip_gen: v7x
topology: tpu7x:2x2x1
jax: 0.10.0
libtpu: 0.0.40
codegen_flags: <defaults>
</compile_context>

<pallas_src>
import functools

import jax
import jax.numpy as jnp
from jax.experimental import pallas as pl
from jax.experimental.pallas import tpu as pltpu

# Row layout of the packed (16, CP) per-channel parameter table.
_R_S1A, _R_T1A, _R_S2A, _R_T2A = 0, 1, 2, 3   # local_att  scale/shift (folded BN)
_R_S1B, _R_T1B, _R_S2B, _R_T2B = 4, 5, 6, 7   # local_att2 scale/shift (folded BN)
_R_GB1, _R_GB2 = 8, 9                         # global_att biases
_VEC_ROWS = 16


# --------------------------------------------------------------------------
# Hardware-aware defaults
# --------------------------------------------------------------------------
def _hw_defaults():
    """VMEM budget / fused-vs-tiled crossover / streaming tile size per chip.

    v5e & v6e: 128 MiB VMEM per TensorCore -> push the 3-HBM-transfer fused
    path much further and use larger streaming tiles.  v7x: 64 MiB shared by
    two TCs -> conservative.  Falls back to the conservative settings if the
    hardware query is unavailable."""
    cap = 0
    try:
        cap = int(getattr(pltpu.get_tpu_info(), "vmem_capacity_bytes", 0))
    except Exception:
        pass
    if cap >= 100 * 1024 * 1024:                       # v5e / v6e
        return {"vmem_limit": 96 * 1024 * 1024,
                "fused_max_rows": 6144, "tile_rows": 2048}
    return {"vmem_limit": 48 * 1024 * 1024,            # v7x / unknown
            "fused_max_rows": 2048, "tile_rows": 1024}


# --------------------------------------------------------------------------
# In-kernel building blocks
# --------------------------------------------------------------------------
def _local_block(z, w1, w2, vec, row0, pcr):
    """conv1x1 -> BN -> ReLU -> conv1x1 -> BN (folded), packed lane layout.
    z: (T, CP) f32; w1: (CP, PCR) bf16; w2: (PCR, CP) bf16."""
    s1 = vec[row0 + 0:row0 + 1, :pcr]
    t1 = vec[row0 + 1:row0 + 2, :pcr]
    s2 = vec[row0 + 2:row0 + 3, :]
    t2 = vec[row0 + 3:row0 + 4, :]
    h = jnp.dot(z.astype(jnp.bfloat16), w1, preferred_element_type=jnp.float32)
    h = jnp.maximum(h * s1 + t1, 0.0)
    y = jnp.dot(h.astype(jnp.bfloat16), w2, preferred_element_type=jnp.float32)
    return y * s2 + t2


def _global_block(z_sum, gw1, gw2, vec, cr):
    """global_att branch on a packed row-sum (f32).  gw1 folds both the 1/HW
    mean divisor and the lane-group reduction (stacked rows); gw2 is lane-tiled
    so the result broadcasts against packed activations."""
    g = jnp.dot(z_sum, gw1, preferred_element_type=jnp.float32) \
        + vec[_R_GB1:_R_GB1 + 1, :cr]
    g = jnp.maximum(g, 0.0)
    return jnp.dot(g, gw2, preferred_element_type=jnp.float32) \
        + vec[_R_GB2:_R_GB2 + 1, :]


# --------------------------------------------------------------------------
# Kernels
# --------------------------------------------------------------------------
def _fused_kernel(x_ref, r_ref, w1a_ref, w2a_ref, w1b_ref, w2b_ref,
                  gw1_ref, gw2_ref, vec_ref, o_ref, *, pcr, cr):
    """Small-HW path: whole packed slab per batch element, both global_att
    branches evaluated in-kernel (3 HBM slab transfers total)."""
    # TODO(synk): with N == 1 on v7x this path runs on a single TensorCore;
    # splitting rows needs a cross-core reduction of the global pools.
    x = x_ref[...].astype(jnp.float32)
    r = r_ref[...].astype(jnp.float32)
    vec = vec_ref[...]
    gw1 = gw1_ref[...]
    gw2 = gw2_ref[...]

    d = x - r
    xa = x + r
    xl = _local_block(xa, w1a_ref[...], w2a_ref[...], vec, _R_S1A, pcr)
    xg = _global_block(jnp.sum(xa, axis=0, keepdims=True), gw1, gw2, vec, cr)
    wei = jax.nn.sigmoid(xl + xg)
    xi = r + d * wei                                       # 3-op blend

    xl2 = _local_block(xi, w1b_ref[...], w2b_ref[...], vec, _R_S1B, pcr)
    # forward() reuses global_att (not global_att2) — same weights on purpose.
    xg2 = _global_block(jnp.sum(xi, axis=0, keepdims=True), gw1, gw2, vec, cr)
    wei2 = jax.nn.sigmoid(xl2 + xg2)
    o_ref[...] = (r + d * wei2).astype(o_ref.dtype)


def _pass1_kernel(x_ref, r_ref, xg_ref, w1_ref, w2_ref, vec_ref, sum_ref,
                  *, pcr, rows, tile, half):
    """Tiled pass 1: per-tile wei / xi, accumulate per-core partial sums of xi
    over the (arbitrary) inner tile axis.  Handles ragged / duplicated tiles
    via iota masking against the un-clamped global row offset."""
    c = pl.program_id(1)
    t = pl.program_id(2)

    @pl.when(t == 0)
    def _():
        sum_ref[...] = jnp.zeros_like(sum_ref)

    x = x_ref[...].astype(jnp.float32)
    r = r_ref[...].astype(jnp.float32)
    xl = _local_block(x + r, w1_ref[...], w2_ref[...], vec_ref[...], _R_S1A, pcr)
    wei = jax.nn.sigmoid(xl + xg_ref[...])
    xi = r + (x - r) * wei                                 # 3-op blend

    # Mask rows outside the valid range of this (possibly clamped) tile:
    #   * the ragged tail of the final tile (partial block -> garbage rows)
    #   * fully duplicated blocks created by clamping the 2-way core split.
    nvalid = rows - (c * half + t) * tile
    row_ids = jax.lax.broadcasted_iota(jnp.int32, xi.shape, 0)
    xi = jnp.where(row_ids < nvalid, xi, 0.0)

    sum_ref[0:1, :] += jnp.sum(xi, axis=0, keepdims=True)


def _pass2_kernel(x_ref, r_ref, xg_ref, xg2_ref, w1a_ref, w2a_ref,
                  w1b_ref, w2b_ref, vec_ref, o_ref, *, pcr):
    """Tiled pass 2: recompute xi (cheaper than an HBM round-trip), second
    attention stage, final blend.  Ragged tail rows produce garbage that the
    clamped output DMA drops."""
    x = x_ref[...].astype(jnp.float32)
    r = r_ref[...].astype(jnp.float32)
    vec = vec_ref[...]

    d = x - r
    xl = _local_block(x + r, w1a_ref[...], w2a_ref[...], vec, _R_S1A, pcr)
    wei = jax.nn.sigmoid(xl + xg_ref[...])
    xi = r + d * wei

    xl2 = _local_block(xi, w1b_ref[...], w2b_ref[...], vec, _R_S1B, pcr)
    wei2 = jax.nn.sigmoid(xl2 + xg2_ref[...])
    o_ref[...] = (r + d * wei2).astype(o_ref.dtype)


# --------------------------------------------------------------------------
# Parameter preparation
# --------------------------------------------------------------------------
def _fold_bn(gamma, beta, mean, var, eps=1e-5):
    scale = gamma / jnp.sqrt(var + eps)
    shift = beta - mean * scale
    return scale, shift


def _make_layout(p, pack):
    """Build the packed weight layout for one channel-packing factor."""
    C, Cr = p["la_w1"].shape
    cp = pack * C

    eye = jnp.eye(pack, dtype=jnp.float32)
    bdiag = lambda w: jnp.kron(eye, w).astype(jnp.bfloat16)   # block-diag, bf16
    tile = lambda v: jnp.tile(v, (1, pack))
    padl = lambda v: jnp.pad(v, ((0, 0), (0, cp - v.shape[1])))

    vec = jnp.concatenate([
        padl(tile(p["la_s1"])), padl(tile(p["la_t1"])),
        tile(p["la_s2"]), tile(p["la_t2"]),
        padl(tile(p["la2_s1"])), padl(tile(p["la2_t1"])),
        tile(p["la2_s2"]), tile(p["la2_t2"]),
        padl(p["ga_b1"]), tile(p["ga_b2"]),
        jnp.zeros((_VEC_ROWS - 10, cp), jnp.float32),
    ], axis=0)                                                # (16, CP) f32

    return {
        "w1a": bdiag(p["la_w1"]), "w2a": bdiag(p["la_w2"]),
        "w1b": bdiag(p["la2_w1"]), "w2b": bdiag(p["la2_w2"]),
        "vec": vec,
        # global_att weights (f32), re-laid-out for the packed lane format
        "ga_w1s": jnp.concatenate([p["ga_w1"]] * pack, axis=0),   # (CP, Cr)
        "ga_w2t": jnp.concatenate([p["ga_w2"]] * pack, axis=1),   # (Cr, CP)
    }


def prepare_params(p):
    """Pack raw (channels-last, BN-folded) iAFF params for the Pallas kernels.

    One layout is built per candidate packing factor (every divisor of
    128 // C) so the wrapper can always pick a pack that divides H*W and avoid
    any HBM-materialised padding.  The weights are tiny, so this is free."""
    C, _ = p["la_w1"].shape
    pack_max = 128 // C if (C < 128 and 128 % C == 0) else 1
    packs = [d for d in range(pack_max, 0, -1) if pack_max % d == 0]
    return {
        "layouts": {pack: _make_layout(p, pack) for pack in packs},
        # unpacked copies for the tiny plain-JAX global branch (tiled path)
        "ga_w1": p["ga_w1"], "ga_b1": p["ga_b1"],
        "ga_w2": p["ga_w2"], "ga_b2": p["ga_b2"],
    }


# --------------------------------------------------------------------------
# Wrappers
# --------------------------------------------------------------------------
def _global_att_f32(pooled, pp):
    """Tiny (N, C) global_att branch in plain JAX / fp32."""
    g = jnp.maximum(pooled @ pp["ga_w1"] + pp["ga_b1"], 0.0)
    return g @ pp["ga_w2"] + pp["ga_b2"]


def iaff_forward_nhwc(x, residual, pp, *, tile_rows=None, fused_max_rows=None,
                      out_dtype=None):
    """x, residual: (N, H, W, C) channels-last (f32 or bf16), no transposes.
    pp: dict from prepare_params().  Returns (N, H, W, C) of out_dtype
    (defaults to x.dtype; pass jnp.bfloat16 to halve the output HBM stream)."""
    N, H, W, C = x.shape
    assert residual.shape == x.shape
    HW = H * W
    out_dtype = x.dtype if out_dtype is None else out_dtype

    hw = _hw_defaults()
    vmem_limit = hw["vmem_limit"]
    tile_rows = hw["tile_rows"] if tile_rows is None else tile_rows
    fused_max_rows = hw["fused_max_rows"] if fused_max_rows is None else fused_max_rows

    # Largest packing factor that divides H*W: the packed reshape below is then
    # a free metadata change (no HBM pad / copy, fully lane-dense vregs).
    # NOTE: pack == 1 (C not a divisor of 128, or ragged H*W) is correct but
    # runs lane-masked — expect lower throughput on that path.
    pack = max(d for d in pp["layouts"] if HW % d == 0)
    lay = pp["layouts"][pack]
    cp = pack * C
    Cr = pp["ga_w1"].shape[1]
    pcr = pack * Cr
    rows = HW // pack

    xp = x.reshape(N, rows, cp)
    rp = residual.reshape(N, rows, cp)

    w1a, w2a, w1b, w2b, vec = lay["w1a"], lay["w2a"], lay["w1b"], lay["w2b"], lay["vec"]
    rep = lambda a: pl.BlockSpec(a.shape, lambda *_: (0,) * a.ndim)
    cparams = lambda sem: pltpu.CompilerParams(
        dimension_semantics=sem, vmem_limit_bytes=vmem_limit)

    if rows <= fused_max_rows:
        # ---- fused path: whole packed slab per batch, 3 HBM slab transfers.
        gw1 = lay["ga_w1s"] * (1.0 / HW)          # fold the mean divisor
        gw2 = lay["ga_w2t"]
        dspec = pl.BlockSpec((None, rows, cp), lambda n: (n, 0, 0))
        out = pl.pallas_call(
            functools.partial(_fused_kernel, pcr=pcr, cr=Cr),
            out_shape=jax.ShapeDtypeStruct((N, rows, cp), out_dtype),
            grid_spec=pltpu.PrefetchScalarGridSpec(
                num_scalar_prefetch=0, grid=(N,),
                in_specs=[dspec, dspec, rep(w1a), rep(w2a), rep(w1b), rep(w2b),
                          rep(gw1), rep(gw2), rep(vec)],
                out_specs=dspec),
            compiler_params=cparams(("parallel",)),
        )(xp, rp, w1a, w2a, w1b, w2b, gw1, gw2, vec)
        return out.reshape(N, H, W, C)

    # ---- tiled two-pass path (slab too large for VMEM) -----------------------
    tile = max(8, (min(tile_rows, rows) // 8) * 8)
    n_tiles = -(-rows // tile)
    n_par = 2 if n_tiles >= 2 else 1        # feeds both v7x TCs even when N == 1
    half = -(-n_tiles // n_par)

    # xg = global_att(mean(x + residual)): tiny (N, C) math in plain JAX / f32.
    xa_sum = jnp.sum(xp.astype(jnp.float32) + rp.astype(jnp.float32), axis=1)
    xg = _global_att_f32(xa_sum.reshape(N, pack, C).sum(axis=1) / HW, pp)
    xg_p = jnp.tile(xg, (1, pack)).reshape(N, 1, cp)

    # Pass 1: wei / xi per tile, per-core partial sums of xi (reduced in JAX).
    def xr_map1(n, c, t):
        # Clamp so the split never produces a fully out-of-bounds block; the
        # duplicate is neutralised by the in-kernel mask (nvalid <= 0).
        return (n, jnp.minimum(c * half + t, n_tiles - 1), 0)

    dspec1 = pl.BlockSpec((None, tile, cp), xr_map1)
    bvec1 = pl.BlockSpec((None, 1, cp), lambda n, c, t: (n, 0, 0))
    sum_xi = pl.pallas_call(
        functools.partial(_pass1_kernel, pcr=pcr, rows=rows, tile=tile, half=half),
        out_shape=jax.ShapeDtypeStruct((N, n_par * 8, cp), jnp.float32),
        grid_spec=pltpu.PrefetchScalarGridSpec(
            num_scalar_prefetch=0, grid=(N, n_par, half),
            in_specs=[dspec1, dspec1, bvec1, rep(w1a), rep(w2a), rep(vec)],
            out_specs=pl.BlockSpec((None, 8, cp), lambda n, c, t: (n, c, 0))),
        compiler_params=cparams(("parallel", "parallel", "arbitrary")),
    )(xp, rp, xg_p, w1a, w2a, vec)

    pooled_xi = sum_xi.sum(axis=1).reshape(N, pack, C).sum(axis=1) / HW
    xg2 = _global_att_f32(pooled_xi, pp)      # forward() reuses global_att here
    xg2_p = jnp.tile(xg2, (1, pack)).reshape(N, 1, cp)

    # Pass 2: recompute xi, second attention stage, final blend.  Un-padded
    # output; the ragged last tile's tail rows are dropped by the clamped DMA.
    dspec2 = pl.BlockSpec((None, tile, cp), lambda n, t: (n, t, 0))
    bvec2 = pl.BlockSpec((None, 1, cp), lambda n, t: (n, 0, 0))
    out = pl.pallas_call(
        functools.partial(_pass2_kernel, pcr=pcr),
        out_shape=jax.ShapeDtypeStruct((N, rows, cp), out_dtype),
        grid_spec=pltpu.PrefetchScalarGridSpec(
            num_scalar_prefetch=0, grid=(N, n_tiles),
            in_specs=[dspec2, dspec2, bvec2, bvec2, rep(w1a), rep(w2a),
                      rep(w1b), rep(w2b), rep(vec)],
            out_specs=dspec2),
        compiler_params=cparams(("parallel", "parallel")),
    )(xp, rp, xg_p, xg2_p, w1a, w2a, w1b, w2b, vec)
    return out.reshape(N, H, W, C)


def iaff_forward(x_nchw, residual_nchw, pp, *, tile_rows=None,
                 fused_max_rows=None, out_dtype=None):
    """NCHW-compatible wrapper.  In a channels-last model call
    iaff_forward_nhwc directly — these transposes re-stream both tensors
    through HBM and roughly double total traffic for an HBM-bound kernel."""
    x = jnp.transpose(x_nchw, (0, 2, 3, 1))
    r = jnp.transpose(residual_nchw, (0, 2, 3, 1))
    out = iaff_forward_nhwc(x, r, pp, tile_rows=tile_rows,
                            fused_max_rows=fused_max_rows, out_dtype=out_dtype)
    return jnp.transpose(out, (0, 3, 1, 2))


# --------------------------------------------------------------------------
# Pure-JAX reference (mirrors kernel numerics: bf16 local-conv matmuls with
# f32 accumulation, f32 global branch) and parameter construction
# --------------------------------------------------------------------------
def iaff_reference(x_nchw, r_nchw, p):
    N, C, H, W = x_nchw.shape
    x = jnp.transpose(x_nchw, (0, 2, 3, 1)).reshape(N, H * W, C)
    r = jnp.transpose(r_nchw, (0, 2, 3, 1)).reshape(N, H * W, C)

    def local(z, w1, s1, t1, w2, s2, t2):
        h = jnp.dot(z.astype(jnp.bfloat16), w1.astype(jnp.bfloat16),
                    preferred_element_type=jnp.float32)
        h = jnp.maximum(h * s1 + t1, 0.0)
        y = jnp.dot(h.astype(jnp.bfloat16), w2.astype(jnp.bfloat16),
                    preferred_element_type=jnp.float32)
        return y * s2 + t2

    def glob(z):
        pooled = jnp.mean(z, axis=1, keepdims=True)
        g = jnp.maximum(pooled @ p["ga_w1"] + p["ga_b1"], 0.0)
        return g @ p["ga_w2"] + p["ga_b2"]

    xa = x + r
    wei = jax.nn.sigmoid(local(xa, p["la_w1"], p["la_s1"], p["la_t1"],
                               p["la_w2"], p["la_s2"], p["la_t2"]) + glob(xa))
    xi = x * wei + r * (1.0 - wei)
    wei2 = jax.nn.sigmoid(local(xi, p["la2_w1"], p["la2_s1"], p["la2_t1"],
                                p["la2_w2"], p["la2_s2"], p["la2_t2"]) + glob(xi))
    out = x * wei2 + r * (1.0 - wei2)
    return jnp.transpose(out.reshape(N, H, W, C), (0, 3, 1, 2))


def make_params(key, channels=64, r=4):
    """Random iAFF parameters (inference-mode BN folded), channels-last layout:
    1x1 conv weights stored as (Cin, Cout)."""
    Cr = channels // r
    keys = jax.random.split(key, 32)
    k = iter(keys)

    conv_w = lambda ci, co: 0.2 * jax.random.normal(next(k), (ci, co), jnp.float32)
    vec = lambda n: 0.1 * jax.random.normal(next(k), (1, n), jnp.float32)

    def bn(n):
        gamma = 1.0 + 0.1 * jax.random.normal(next(k), (1, n), jnp.float32)
        beta = 0.1 * jax.random.normal(next(k), (1, n), jnp.float32)
        mean = 0.1 * jax.random.normal(next(k), (1, n), jnp.float32)
        var = 0.5 + jax.random.uniform(next(k), (1, n), jnp.float32)
        return _fold_bn(gamma, beta, mean, var)

    p = {}
    # local_att: conv(C->Cr)+bias -> BN -> ReLU -> conv(Cr->C)+bias -> BN
    w1, b1 = conv_w(channels, Cr), vec(Cr); s1, t1 = bn(Cr)
    w2, b2 = conv_w(Cr, channels), vec(channels); s2, t2 = bn(channels)
    p.update(la_w1=w1, la_s1=s1, la_t1=b1 * s1 + t1,
             la_w2=w2, la_s2=s2, la_t2=b2 * s2 + t2)
    # global_att: avgpool -> conv(C->Cr)+bias -> ReLU -> conv(Cr->C)+bias
    p.update(ga_w1=conv_w(channels, Cr), ga_b1=vec(Cr),
             ga_w2=conv_w(Cr, channels), ga_b2=vec(channels))
    # local_att2: same structure as local_att
    w1, b1 = conv_w(channels, Cr), vec(Cr); s1, t1 = bn(Cr)
    w2, b2 = conv_w(Cr, channels), vec(channels); s2, t2 = bn(channels)
    p.update(la2_w1=w1, la2_s1=s1, la2_t1=b1 * s1 + t1,
             la2_w2=w2, la2_s2=s2, la2_t2=b2 * s2 + t2)
    # global_att2 exists in __init__ but forward() never uses it -> not materialized.
    return p


def _check(out, ref, name):
    # Kernel and reference are two valid bf16 evaluations whose intermediate
    # roundings can diverge slightly through the sigmoid gates.
    err_max = float(jnp.max(jnp.abs(out - ref)))
    err_mean = float(jnp.mean(jnp.abs(out - ref)))
    assert err_max < 5e-2 and err_mean < 5e-3, (name, err_max, err_mean)


if __name__ == "__main__":
    key = jax.random.PRNGKey(0)
    kx, kr, kp = jax.random.split(key, 3)

    C = 64  # module defaults: channels=64, r=4
    raw = make_params(kp, channels=C, r=4)
    pp = prepare_params(raw)

    fwd = jax.jit(iaff_forward,
                  static_argnames=("tile_rows", "fused_max_rows", "out_dtype"))

    # Case 1: small spatial size -> single fused kernel (whole packed slab).
    x1 = jax.random.normal(kx, (2, C, 16, 16), jnp.float32)
    r1 = jax.random.normal(kr, (2, C, 16, 16), jnp.float32)
    o1 = jax.block_until_ready(fwd(x1, r1, pp))
    assert o1.shape == x1.shape
    _check(o1, iaff_reference(x1, r1, raw), "fused")

    # Case 2: force the tiled two-pass path, tiles divide rows exactly.
    kx2, kr2 = jax.random.split(jax.random.PRNGKey(1))
    x2 = jax.random.normal(kx2, (2, C, 32, 32), jnp.float32)
    r2 = jax.random.normal(kr2, (2, C, 32, 32), jnp.float32)
    o2 = jax.block_until_ready(fwd(x2, r2, pp, tile_rows=256, fused_max_rows=64))
    _check(o2, iaff_reference(x2, r2, raw), "tiled")

    # Case 3: tiled path with a ragged last tile (rows % tile != 0) and an odd
    # tile count (exercises partial blocks, iota masking, clamped 2-way split).
    kx3, kr3 = jax.random.split(jax.random.PRNGKey(2))
    x3 = jax.random.normal(kx3, (2, C, 30, 30), jnp.float32)
    r3 = jax.random.normal(kr3, (2, C, 30, 30), jnp.float32)
    o3 = jax.block_until_ready(fwd(x3, r3, pp, tile_rows=96, fused_max_rows=64))
    _check(o3, iaff_reference(x3, r3, raw), "tiled+ragged")

    # Case 4: odd H*W -> falls back to the pack=1 layout (no padding anywhere).
    kx4, kr4 = jax.random.split(jax.random.PRNGKey(3))
    x4 = jax.random.normal(kx4, (1, C, 9, 9), jnp.float32)
    r4 = jax.random.normal(kr4, (1, C, 9, 9), jnp.float32)
    o4 = jax.block_until_ready(fwd(x4, r4, pp))
    _check(o4, iaff_reference(x4, r4, raw), "fused+pack1")

    print("KERNEL_OK")
</pallas_src>

<mosaic_0001>
module attributes {stable_mosaic.version = 11 : i64} {
  func.func @_fused_kernel(%arg0: i32, %arg1: memref<1x128x128xf32, #tpu.memory_space<vmem>>, %arg2: memref<1x128x128xf32, #tpu.memory_space<vmem>>, %arg3: memref<128x32xbf16, #tpu.memory_space<vmem>>, %arg4: memref<32x128xbf16, #tpu.memory_space<vmem>>, %arg5: memref<128x32xbf16, #tpu.memory_space<vmem>>, %arg6: memref<32x128xbf16, #tpu.memory_space<vmem>>, %arg7: memref<128x16xf32, #tpu.memory_space<vmem>>, %arg8: memref<16x128xf32, #tpu.memory_space<vmem>>, %arg9: memref<16x128xf32, #tpu.memory_space<vmem>>, %arg10: memref<1x128x128xf32, #tpu.memory_space<vmem>>) attributes {dimension_semantics = [#tpu.dimension_semantics<parallel>], iteration_bounds = array<i64: 2>, scalar_prefetch = 0 : i64, scratch_operands = 0 : i64, tpu.core_type = #tpu.core_type<tc>, window_params = [{transform_indices = @transform_0, window_bounds = array<i64: 1, 128, 128>}, {transform_indices = @transform_1, window_bounds = array<i64: 1, 128, 128>}, {pipeline_mode = #tpu.pipeline_mode<synchronous>, transform_indices = @transform_2, window_bounds = array<i64: 128, 32>}, {pipeline_mode = #tpu.pipeline_mode<synchronous>, transform_indices = @transform_3, window_bounds = array<i64: 32, 128>}, {pipeline_mode = #tpu.pipeline_mode<synchronous>, transform_indices = @transform_4, window_bounds = array<i64: 128, 32>}, {pipeline_mode = #tpu.pipeline_mode<synchronous>, transform_indices = @transform_5, window_bounds = array<i64: 32, 128>}, {pipeline_mode = #tpu.pipeline_mode<synchronous>, transform_indices = @transform_6, window_bounds = array<i64: 128, 16>}, {pipeline_mode = #tpu.pipeline_mode<synchronous>, transform_indices = @transform_7, window_bounds = array<i64: 16, 128>}, {pipeline_mode = #tpu.pipeline_mode<synchronous>, transform_indices = @transform_8, window_bounds = array<i64: 16, 128>}, {transform_indices = @transform_9, window_bounds = array<i64: 1, 128, 128>}]} {
    %c0 = arith.constant 0 : index
    %c0_0 = arith.constant 0 : index
    %c0_1 = arith.constant 0 : index
    %0 = vector.load %arg1[%c0, %c0_0, %c0_1] : memref<1x128x128xf32, #tpu.memory_space<vmem>>, vector<1x128x128xf32>
    %1 = vector.shape_cast %0 : vector<1x128x128xf32> to vector<128x128xf32>
    %c0_2 = arith.constant 0 : index
    %c0_3 = arith.constant 0 : index
    %c0_4 = arith.constant 0 : index
    %2 = vector.load %arg2[%c0_2, %c0_3, %c0_4] : memref<1x128x128xf32, #tpu.memory_space<vmem>>, vector<1x128x128xf32>
    %3 = vector.shape_cast %2 : vector<1x128x128xf32> to vector<128x128xf32>
    %c0_5 = arith.constant 0 : index
    %c0_6 = arith.constant 0 : index
    %4 = vector.load %arg9[%c0_5, %c0_6] : memref<16x128xf32, #tpu.memory_space<vmem>>, vector<16x128xf32>
    %c0_7 = arith.constant 0 : index
    %c0_8 = arith.constant 0 : index
    %5 = vector.load %arg7[%c0_7, %c0_8] : memref<128x16xf32, #tpu.memory_space<vmem>>, vector<128x16xf32>
    %c0_9 = arith.constant 0 : index
    %c0_10 = arith.constant 0 : index
    %6 = vector.load %arg8[%c0_9, %c0_10] : memref<16x128xf32, #tpu.memory_space<vmem>>, vector<16x128xf32>
    %7 = arith.subf %1, %3 : vector<128x128xf32>
    %8 = arith.addf %1, %3 : vector<128x128xf32>
    %c0_11 = arith.constant 0 : index
    %c0_12 = arith.constant 0 : index
    %9 = vector.load %arg3[%c0_11, %c0_12] : memref<128x32xbf16, #tpu.memory_space<vmem>>, vector<128x32xbf16>
    %c0_13 = arith.constant 0 : index
    %c0_14 = arith.constant 0 : index
    %10 = vector.load %arg4[%c0_13, %c0_14] : memref<32x128xbf16, #tpu.memory_space<vmem>>, vector<32x128xbf16>
    %11 = vector.extract_strided_slice %4 {offsets = [0, 0], sizes = [1, 32], strides = [1, 1]} : vector<16x128xf32> to vector<1x32xf32>
    %12 = vector.extract_strided_slice %4 {offsets = [1, 0], sizes = [1, 32], strides = [1, 1]} : vector<16x128xf32> to vector<1x32xf32>
    %13 = vector.extract_strided_slice %4 {offsets = [2, 0], sizes = [1, 128], strides = [1, 1]} : vector<16x128xf32> to vector<1x128xf32>
    %14 = vector.extract_strided_slice %4 {offsets = [3, 0], sizes = [1, 128], strides = [1, 1]} : vector<16x128xf32> to vector<1x128xf32>
    %15 = arith.truncf %8 : vector<128x128xf32> to vector<128x128xbf16>
    %cst = arith.constant dense<0.000000e+00> : vector<128x32xf32>
    %16 = tpu.matmul %15, %9, %cst {dimension_numbers = #tpu.dot_dimension_numbers<[1], [0], [0], [1], [0, 0, 1, 1], [], []>} : vector<128x128xbf16>, vector<128x32xbf16>, vector<128x32xf32> -> vector<128x32xf32>
    %17 = vector.broadcast %11 : vector<1x32xf32> to vector<128x32xf32>
    %18 = arith.mulf %16, %17 : vector<128x32xf32>
    %19 = vector.broadcast %12 : vector<1x32xf32> to vector<128x32xf32>
    %20 = arith.addf %18, %19 : vector<128x32xf32>
    %cst_15 = arith.constant 0.000000e+00 : f32
    %21 = vector.broadcast %cst_15 : f32 to vector<128x32xf32>
    %22 = arith.maximumf %20, %21 : vector<128x32xf32>
    %23 = arith.truncf %22 : vector<128x32xf32> to vector<128x32xbf16>
    %cst_16 = arith.constant dense<0.000000e+00> : vector<128x128xf32>
    %24 = tpu.matmul %23, %10, %cst_16 {dimension_numbers = #tpu.dot_dimension_numbers<[1], [0], [0], [1], [0, 0, 1, 1], [], []>} : vector<128x32xbf16>, vector<32x128xbf16>, vector<128x128xf32> -> vector<128x128xf32>
    %25 = vector.broadcast %13 : vector<1x128xf32> to vector<128x128xf32>
    %26 = arith.mulf %24, %25 : vector<128x128xf32>
    %27 = vector.broadcast %14 : vector<1x128xf32> to vector<128x128xf32>
    %28 = arith.addf %26, %27 : vector<128x128xf32>
    %cst_17 = arith.constant dense<0.000000e+00> : vector<128xf32>
    %29 = vector.multi_reduction <add>, %8, %cst_17 [0] : vector<128x128xf32> to vector<128xf32>
    %30 = vector.shape_cast %29 : vector<128xf32> to vector<1x128xf32>
    %cst_18 = arith.constant dense<0.000000e+00> : vector<1x16xf32>
    %31 = tpu.matmul %30, %5, %cst_18 {dimension_numbers = #tpu.dot_dimension_numbers<[1], [0], [0], [1], [0, 0, 1, 1], [], []>} : vector<1x128xf32>, vector<128x16xf32>, vector<1x16xf32> -> vector<1x16xf32>
    %32 = vector.extract_strided_slice %4 {offsets = [8, 0], sizes = [1, 16], strides = [1, 1]} : vector<16x128xf32> to vector<1x16xf32>
    %33 = arith.addf %31, %32 : vector<1x16xf32>
    %cst_19 = arith.constant 0.000000e+00 : f32
    %34 = vector.broadcast %cst_19 : f32 to vector<1x16xf32>
    %35 = arith.maximumf %33, %34 : vector<1x16xf32>
    %cst_20 = arith.constant dense<0.000000e+00> : vector<1x128xf32>
    %36 = tpu.matmul %35, %6, %cst_20 {dimension_numbers = #tpu.dot_dimension_numbers<[1], [0], [0], [1], [0, 0, 1, 1], [], []>} : vector<1x16xf32>, vector<16x128xf32>, vector<1x128xf32> -> vector<1x128xf32>
    %37 = vector.extract_strided_slice %4 {offsets = [9, 0], sizes = [1, 128], strides = [1, 1]} : vector<16x128xf32> to vector<1x128xf32>
    %38 = arith.addf %36, %37 : vector<1x128xf32>
    %39 = vector.broadcast %38 : vector<1x128xf32> to vector<128x128xf32>
    %40 = arith.addf %28, %39 : vector<128x128xf32>
    %41 = arith.negf %40 : vector<128x128xf32>
    %42 = math.exp %41 : vector<128x128xf32>
    %cst_21 = arith.constant 1.000000e+00 : f32
    %43 = vector.broadcast %cst_21 : f32 to vector<128x128xf32>
    %44 = arith.addf %43, %42 : vector<128x128xf32>
    %45 = arith.divf %43, %44 : vector<128x128xf32>
    %46 = arith.mulf %7, %45 : vector<128x128xf32>
    %47 = arith.addf %3, %46 : vector<128x128xf32>
    %c0_22 = arith.constant 0 : index
    %c0_23 = arith.constant 0 : index
    %48 = vector.load %arg5[%c0_22, %c0_23] : memref<128x32xbf16, #tpu.memory_space<vmem>>, vector<128x32xbf16>
    %c0_24 = arith.constant 0 : index
    %c0_25 = arith.constant 0 : index
    %49 = vector.load %arg6[%c0_24, %c0_25] : memref<32x128xbf16, #tpu.memory_space<vmem>>, vector<32x128xbf16>
    %50 = vector.extract_strided_slice %4 {offsets = [4, 0], sizes = [1, 32], strides = [1, 1]} : vector<16x128xf32> to vector<1x32xf32>
    %51 = vector.extract_strided_slice %4 {offsets = [5, 0], sizes = [1, 32], strides = [1, 1]} : vector<16x128xf32> to vector<1x32xf32>
    %52 = vector.extract_strided_slice %4 {offsets = [6, 0], sizes = [1, 128], strides = [1, 1]} : vector<16x128xf32> to vector<1x128xf32>
    %53 = vector.extract_strided_slice %4 {offsets = [7, 0], sizes = [1, 128], strides = [1, 1]} : vector<16x128xf32> to vector<1x128xf32>
    %54 = arith.truncf %47 : vector<128x128xf32> to vector<128x128xbf16>
    %cst_26 = arith.constant dense<0.000000e+00> : vector<128x32xf32>
    %55 = tpu.matmul %54, %48, %cst_26 {dimension_numbers = #tpu.dot_dimension_numbers<[1], [0], [0], [1], [0, 0, 1, 1], [], []>} : vector<128x128xbf16>, vector<128x32xbf16>, vector<128x32xf32> -> vector<128x32xf32>
    %56 = vector.broadcast %50 : vector<1x32xf32> to vector<128x32xf32>
    %57 = arith.mulf %55, %56 : vector<128x32xf32>
    %58 = vector.broadcast %51 : vector<1x32xf32> to vector<128x32xf32>
    %59 = arith.addf %57, %58 : vector<128x32xf32>
    %cst_27 = arith.constant 0.000000e+00 : f32
    %60 = vector.broadcast %cst_27 : f32 to vector<128x32xf32>
    %61 = arith.maximumf %59, %60 : vector<128x32xf32>
    %62 = arith.truncf %61 : vector<128x32xf32> to vector<128x32xbf16>
    %cst_28 = arith.constant dense<0.000000e+00> : vector<128x128xf32>
    %63 = tpu.matmul %62, %49, %cst_28 {dimension_numbers = #tpu.dot_dimension_numbers<[1], [0], [0], [1], [0, 0, 1, 1], [], []>} : vector<128x32xbf16>, vector<32x128xbf16>, vector<128x128xf32> -> vector<128x128xf32>
    %64 = vector.broadcast %52 : vector<1x128xf32> to vector<128x128xf32>
    %65 = arith.mulf %63, %64 : vector<128x128xf32>
    %66 = vector.broadcast %53 : vector<1x128xf32> to vector<128x128xf32>
    %67 = arith.addf %65, %66 : vector<128x128xf32>
    %cst_29 = arith.constant dense<0.000000e+00> : vector<128xf32>
    %68 = vector.multi_reduction <add>, %47, %cst_29 [0] : vector<128x128xf32> to vector<128xf32>
    %69 = vector.shape_cast %68 : vector<128xf32> to vector<1x128xf32>
    %cst_30 = arith.constant dense<0.000000e+00> : vector<1x16xf32>
    %70 = tpu.matmul %69, %5, %cst_30 {dimension_numbers = #tpu.dot_dimension_numbers<[1], [0], [0], [1], [0, 0, 1, 1], [], []>} : vector<1x128xf32>, vector<128x16xf32>, vector<1x16xf32> -> vector<1x16xf32>
    %71 = vector.extract_strided_slice %4 {offsets = [8, 0], sizes = [1, 16], strides = [1, 1]} : vector<16x128xf32> to vector<1x16xf32>
    %72 = arith.addf %70, %71 : vector<1x16xf32>
    %cst_31 = arith.constant 0.000000e+00 : f32
    %73 = vector.broadcast %cst_31 : f32 to vector<1x16xf32>
    %74 = arith.maximumf %72, %73 : vector<1x16xf32>
    %cst_32 = arith.constant dense<0.000000e+00> : vector<1x128xf32>
    %75 = tpu.matmul %74, %6, %cst_32 {dimension_numbers = #tpu.dot_dimension_numbers<[1], [0], [0], [1], [0, 0, 1, 1], [], []>} : vector<1x16xf32>, vector<16x128xf32>, vector<1x128xf32> -> vector<1x128xf32>
    %76 = vector.extract_strided_slice %4 {offsets = [9, 0], sizes = [1, 128], strides = [1, 1]} : vector<16x128xf32> to vector<1x128xf32>
    %77 = arith.addf %75, %76 : vector<1x128xf32>
    %78 = vector.broadcast %77 : vector<1x128xf32> to vector<128x128xf32>
    %79 = arith.addf %67, %78 : vector<128x128xf32>
    %80 = arith.negf %79 : vector<128x128xf32>
    %81 = math.exp %80 : vector<128x128xf32>
    %cst_33 = arith.constant 1.000000e+00 : f32
    %82 = vector.broadcast %cst_33 : f32 to vector<128x128xf32>
    %83 = arith.addf %82, %81 : vector<128x128xf32>
    %84 = arith.divf %82, %83 : vector<128x128xf32>
    %85 = arith.mulf %7, %84 : vector<128x128xf32>
    %86 = arith.addf %3, %85 : vector<128x128xf32>
    %c0_34 = arith.constant 0 : index
    %c0_35 = arith.constant 0 : index
    %c0_36 = arith.constant 0 : index
    %87 = vector.load %arg10[%c0_34, %c0_35, %c0_36] : memref<1x128x128xf32, #tpu.memory_space<vmem>>, vector<1x128x128xf32>
    %88 = vector.shape_cast %87 : vector<1x128x128xf32> to vector<128x128xf32>
    %89 = vector.shape_cast %86 : vector<128x128xf32> to vector<1x128x128xf32>
    tpu.vector_store %arg10[%c0_34, %c0_35, %c0_36], %89 {strides = array<i32>} : memref<1x128x128xf32, #tpu.memory_space<vmem>>, vector<1x128x128xf32>,
    return
  }
  func.func @transform_0(%arg0: i32) -> (i32, i32, i32) {
    %c0_i32 = arith.constant 0 : i32
    %c0_i32_0 = arith.constant 0 : i32
    %c0_i32_1 = arith.constant 0 : i32
    return %arg0, %c0_i32, %c0_i32_0 : i32, i32, i32
  }
  func.func @transform_1(%arg0: i32) -> (i32, i32, i32) {
    %c0_i32 = arith.constant 0 : i32
    %c0_i32_0 = arith.constant 0 : i32
    %c0_i32_1 = arith.constant 0 : i32
    return %arg0, %c0_i32, %c0_i32_0 : i32, i32, i32
  }
  func.func @transform_2(%arg0: i32) -> (i32, i32) {
    %c0_i32 = arith.constant 0 : i32
    %c0_i32_0 = arith.constant 0 : i32
    %c0_i32_1 = arith.constant 0 : i32
    return %c0_i32, %c0_i32_0 : i32, i32
  }
  func.func @transform_3(%arg0: i32) -> (i32, i32) {
    %c0_i32 = arith.constant 0 : i32
    %c0_i32_0 = arith.constant 0 : i32
    %c0_i32_1 = arith.constant 0 : i32
    return %c0_i32, %c0_i32_0 : i32, i32
  }
  func.func @transform_4(%arg0: i32) -> (i32, i32) {
    %c0_i32 = arith.constant 0 : i32
    %c0_i32_0 = arith.constant 0 : i32
    %c0_i32_1 = arith.constant 0 : i32
    return %c0_i32, %c0_i32_0 : i32, i32
  }
  func.func @transform_5(%arg0: i32) -> (i32, i32) {
    %c0_i32 = arith.constant 0 : i32
    %c0_i32_0 = arith.constant 0 : i32
    %c0_i32_1 = arith.constant 0 : i32
    return %c0_i32, %c0_i32_0 : i32, i32
  }
  func.func @transform_6(%arg0: i32) -> (i32, i32) {
    %c0_i32 = arith.constant 0 : i32
    %c0_i32_0 = arith.constant 0 : i32
    %c0_i32_1 = arith.constant 0 : i32
    return %c0_i32, %c0_i32_0 : i32, i32
  }
  func.func @transform_7(%arg0: i32) -> (i32, i32) {
    %c0_i32 = arith.constant 0 : i32
    %c0_i32_0 = arith.constant 0 : i32
    %c0_i32_1 = arith.constant 0 : i32
    return %c0_i32, %c0_i32_0 : i32, i32
  }
  func.func @transform_8(%arg0: i32) -> (i32, i32) {
    %c0_i32 = arith.constant 0 : i32
    %c0_i32_0 = arith.constant 0 : i32
    %c0_i32_1 = arith.constant 0 : i32
    return %c0_i32, %c0_i32_0 : i32, i32
  }
  func.func @transform_9(%arg0: i32) -> (i32, i32, i32) {
    %c0_i32 = arith.constant 0 : i32
    %c0_i32_0 = arith.constant 0 : i32
    %c0_i32_1 = arith.constant 0 : i32
    return %arg0, %c0_i32, %c0_i32_0 : i32, i32, i32
  }
}

</mosaic_0001>

<bundles_post_ra>
// kernel: iaff_forward.1
= control target key start
LH: loop header
LB: loop body
LE: loop exit
PB: predicated region body
PF: predicated region fallthrough
CT: control target
= control target key end

     0   :  { %s2629_s30 = smov 0   ;;  %s3256_s0 = inlined_call_operand.vmem [shape: f32[2,128,128], index: 0, kind: input, shape index: {}]   ;;  %s3257_s1 = inlined_call_operand.vmem [shape: f32[2,128,128], index: 1, kind: input, shape index: {}]   ;;  %s3258_s2 = inlined_call_operand.vmem [shape: bf16[128,32], index: 2, kind: input, shape index: {}]   ;;  %s3259_s3 = inlined_call_operand.vmem [shape: bf16[32,128], index: 3, kind: input, shape index: {}]   ;;  %s3260_s4 = inlined_call_operand.vmem [shape: bf16[128,32], index: 4, kind: input, shape index: {}]   ;;  %s3261_s5 = inlined_call_operand.vmem [shape: bf16[32,128], index: 5, kind: input, shape index: {}]   ;;  %s3262_s6 = inlined_call_operand.vmem [shape: f32[128,16], index: 6, kind: input, shape index: {}]   ;;  %s3263_s7 = inlined_call_operand.vmem [shape: f32[16,128], index: 7, kind: input, shape index: {}]   ;;  %s3264_s8 = inlined_call_operand.vmem [shape: f32[16,128], index: 8, kind: input, shape index: {}]   ;;  %s3265_s9 = inlined_call_operand.vmem [shape: f32[2,128,128], index: 9, kind: output, shape index: {}]  }
   0x1 LB: > { %s1972_s10 = sadd.s32 4294967295, %s2574_s30   ;;  %p1976_p0 = scmp.ge.s32.totalorder %s2574_s30, 1  ;;  %s2574_s30 = sphi %s2629_s30, %s19_s30  }
   0x2   : > { %p297_p1 = scmp.lt.s32.totalorder %s2574_s30, 3 }
   0x4   : > { %p298_p2 = pnand %p1976_p0, %p297_p1 }
   0x6   : > { %301 = sbr.rel (%p298_p2) target bundleno = 1512 (0x5e8), region = 56 }
   0xd   : > { %v2403_v0 = vld [vmem:[%s3258_s2] sm:$0xff]   ;;  %p338_p3 = scmp.lt.s32.totalorder %s1972_s10, 1  ;;  %v2404_v1 = vld [vmem:[%s3258_s2 + $0x8] sm:$0xff]   ;;  %v2405_v2 = vld [vmem:[%s3258_s2 + $0x10] sm:$0xff]   ;;  %vm687_vm0 = vcmask 261120   ;;  %vm2577_vm1 = vmmov 0  }
   0xe   : > { %2150 = vmatprep.subr.bf16.mxu0 %v2403_v0  ;;  %v2406_v3 = vld [vmem:[%s3258_s2 + $0x18] sm:$0xff]   ;;  %v2407_v12 = vld [vmem:[%s3258_s2 + $0x20] sm:$0xff]   ;;  %v2408_v22 = vld [vmem:[%s3258_s2 + $0x28] sm:$0xff]   ;;  %vm944_vm2 = vcmask 130048  }
   0xf   : > { %s3337_s10 = smov (!%p338_p3, %s1972_s10), 1  ;;  %2151 = vmatpush3.bf16.msra.mxu0 %v2403_v0  ;;  %v2409_v28 = vld [vmem:[%s3258_s2 + $0x30] sm:$0xff]   ;;  %v2410_v38 = vld [vmem:[%s3258_s2 + $0x38] sm:$0xff]  }
  0x10   : > { %2152 = vmatprep.subr.bf16.mxu0 %v2404_v1  ;;  %s2646_s17 = sshll.u32 %s3337_s10, 7 }
  0x11   : > { %s2652_s20 = scalar_lea.vmem %s3256_s0, %s2646_s17  ;;  %s2658_s23 = scalar_lea.vmem %s3257_s1, %s2646_s17 }
  0x12   : > { %v2664_v4 = vld [vmem:[%s2652_s20] sm:$0xff]  ;;  %v2667_v5 = vld [vmem:[%s2652_s20 + $0x8] sm:$0xff]  ;;  %v2676_v8 = vld [vmem:[%s2652_s20 + $0x10] sm:$0xff]  ;;  %s3204_s10 = scalar_lea.vmem %s3265_s9, %s2646_s17 }
  0x13   : > { %2153 = vmatpush3.bf16.msra.mxu0 %v2404_v1  ;;  %v2670_v6 = vld [vmem:[%s2658_s23] sm:$0xff]  ;;  %v2673_v7 = vld [vmem:[%s2658_s23 + $0x8] sm:$0xff]  ;;  %v2679_v9 = vld [vmem:[%s2658_s23 + $0x10] sm:$0xff] }
  0x14   : > { %2154 = vmatprep.subr.bf16.mxu0 %v2405_v2  ;;  %v422_v10 = vadd.f32 %v2670_v6, %v2664_v4  ;;  %v423_v11 = vadd.f32 %v2673_v7, %v2667_v5  ;;  %v2689_v13 = vld [vmem:[%s2652_s20 + $0x18] sm:$0xff]  ;;  %v424_v15 = vadd.f32 %v2679_v9, %v2676_v8  ;;  %v2697_v18 = vld [vmem:[%s2652_s20 + $0x20] sm:$0xff]  ;;  %v2708_v23 = vld [vmem:[%s2652_s20 + $0x28] sm:$0xff] }
  0x15   : > { %v2692_v14 = vld [vmem:[%s2658_s23 + $0x18] sm:$0xff]  ;;  %v2700_v19 = vld [vmem:[%s2658_s23 + $0x20] sm:$0xff]  ;;  %v2711_v24 = vld [vmem:[%s2658_s23 + $0x28] sm:$0xff] }
  0x16   : > { %v458_v16 = vpack.c.bf16 %v423_v11, %v422_v10  ;;  %v849_v17 = vadd.f32 %v423_v11, %v422_v10  ;;  %v425_v21 = vadd.f32 %v2692_v14, %v2689_v13  ;;  %v426_v26 = vadd.f32 %v2700_v19, %v2697_v18  ;;  %v2716_v27 = vld [vmem:[%s2652_s20 + $0x30] sm:$0xff]  ;;  %v2722_v29 = vld [vmem:[%s2652_s20 + $0x38] sm:$0xff]  ;;  %v2733_v34 = vld [vmem:[%s2652_s20 + $0x40] sm:$0xff] }
  0x17   : > { %2155 = vmatpush3.bf16.msra.mxu0 %v2405_v2  ;;  %v2725_v30 = vld [vmem:[%s2658_s23 + $0x30] sm:$0xff]  ;;  %v2728_v31 = vld [vmem:[%s2658_s23 + $0x38] sm:$0xff]  ;;  %v427_v32 = vadd.f32 %v2711_v24, %v2708_v23  ;;  %v2736_v35 = vld [vmem:[%s2658_s23 + $0x40] sm:$0xff] }
  0x18   : > { %2156 = vmatprep.subr.bf16.mxu0 %v2406_v3  ;;  %2166 = vmatprep.mubr.bf16.mxu0 %v458_v16  ;;  %v850_v20 = vadd.f32 %v849_v17, %v424_v15  ;;  %v428_v37 = vadd.f32 %v2725_v30, %v2716_v27  ;;  %v2744_v39 = vld [vmem:[%s2652_s20 + $0x48] sm:$0xff]  ;;  %v429_v41 = vadd.f32 %v2728_v31, %v2722_v29  ;;  %v2752_v43 = vld [vmem:[%s2652_s20 + $0x50] sm:$0xff]  ;;  %v2762_v49 = vld [vmem:[%s2652_s20 + $0x58] sm:$0xff] }
  0x19   : > { %v2747_v40 = vld [vmem:[%s2658_s23 + $0x48] sm:$0xff]  ;;  %v2755_v44 = vld [vmem:[%s2658_s23 + $0x50] sm:$0xff]  ;;  %v430_v46 = vadd.f32 %v2736_v35, %v2733_v34  ;;  %v2765_v50 = vld [vmem:[%s2658_s23 + $0x58] sm:$0xff]  ;;  %v459_v53 = vpack.c.bf16 %v425_v21, %v424_v15  ;;  %v460_v56 = vpack.c.bf16 %v427_v32, %v426_v26 }
  0x1a   : > { %v851_v25 = vadd.f32 %v850_v20, %v425_v21  ;;  %v431_v47 = vadd.f32 %v2747_v40, %v2744_v39  ;;  %v432_v52 = vadd.f32 %v2755_v44, %v2752_v43  ;;  %v2770_v54 = vld [vmem:[%s2652_s20 + $0x60] sm:$0xff]  ;;  %v433_v57 = vadd.f32 %v2765_v50, %v2762_v49  ;;  %v2778_v59 = vld [vmem:[%s2652_s20 + $0x68] sm:$0xff]  ;;  %v2786_v63 = vld [vmem:[%s2652_s20 + $0x70] sm:$0xff] }
  0x1b   : > { %2157 = vmatpush3.bf16.msra.mxu0 %v2406_v3  ;;  %3295 = vst [vmem:[#allocation2_spill] sm:$0xff] %v2770_v54  ;;  %v2773_v55 = vld [vmem:[%s2658_s23 + $0x60] sm:$0xff]  ;;  %3297 = vst [vmem:[#allocation4_spill] sm:$0xff] %v2778_v59  ;;  %v2781_v60 = vld [vmem:[%s2658_s23 + $0x68] sm:$0xff]  ;;  %v461_v15 = vpack.c.bf16 %v429_v41, %v428_v37 }
  0x1c   : > { %2158 = vmatprep.subr.bf16.mxu0 %v2407_v12  ;;  %v852_v33 = vadd.f32 %v851_v25, %v426_v26  ;;  %3296 = vst [vmem:[#allocation3_spill] sm:$0xff] %v2773_v55  ;;  %3298 = vst [vmem:[#allocation5_spill] sm:$0xff] %v2781_v60  ;;  %v434_v62 = vadd.f32 %v2773_v55, %v2770_v54  ;;  %v2789_v0 = vld [vmem:[%s2658_s23 + $0x70] sm:$0xff]  ;;  %v435_v1 = vadd.f32 %v2781_v60, %v2778_v59  ;;  %v2794_v3 = vld [vmem:[%s2652_s20 + $0x78] sm:$0xff] }
  0x1d   : > { %3299 = vst [vmem:[#allocation6_spill] sm:$0xff] %v2786_v63  ;;  %3300 = vst [vmem:[#allocation7_spill] sm:$0xff] %v2789_v0  ;;  %v2797_v10 = vld [vmem:[%s2658_s23 + $0x78] sm:$0xff]  ;;  %v462_v16 = vpack.c.bf16 %v431_v47, %v430_v46 }
  0x1e   : > { %v853_v36 = vadd.f32 %v852_v33, %v427_v32  ;;  %3301 = vst [vmem:[#allocation8_spill] sm:$0xff] %v2794_v3  ;;  %3302 = vst [vmem:[#allocation9_spill] sm:$0xff] %v2797_v10  ;;  %v437_v17 = vadd.f32 %v2797_v10, %v2794_v3  ;;  %v464_v25 = vpack.c.bf16 %v435_v1, %v434_v62  ;;  %v2412_v32 = vld [vmem:[%s3259_s3 + $0x8] sm:$0xff]   ;;  %v3268_v33 = vmov 0.0|0.0  }
  0x1f   : > { %2159 = vmatpush3.bf16.msra.mxu0 %v2407_v12  ;;  %v436_v12 = vadd.f32 %v2789_v0, %v2786_v63 }
  0x20   : > { %2160 = vmatprep.subr.bf16.mxu0 %v2408_v22  ;;  %v854_v42 = vadd.f32 %v853_v36, %v428_v37  ;;  %v611_v36 = vlaneseq }
  0x21   : > { %v465_v26 = vpack.c.bf16 %v437_v17, %v436_v12 }
  0x22   : > { %v855_v45 = vadd.f32 %v854_v42, %v429_v41  ;;  %v2812_v37 = vshrl.u32 %v611_v36, 7  ;;  %v2820_v41 = vld [vmem:[%s3264_s8] sm:$0xff] }
  0x23   : > { %2161 = vmatpush3.bf16.msra.mxu0 %v2408_v22  ;;  %v463_v22 = vpack.c.bf16 %v433_v57, %v432_v52 }
  0x24   : > { %2162 = vmatprep.subr.bf16.mxu0 %v2409_v28  ;;  %v856_v48 = vadd.f32 %v855_v45, %v430_v46  ;;  %3303 = vst [vmem:[#allocation10_spill] sm:$0xff] %v2812_v37  ;;  %v633_v42 = vsub.s32 1, %v2812_v37 }
  0x26   : > { %v857_v51 = vadd.f32 %v856_v48, %v431_v47  ;;  %v2828_v46 = vrot.slane %v2820_v41, %v633_v42 }
  0x27   : > { %2163 = vmatpush3.bf16.msra.mxu0 %v2409_v28  ;;  %v2411_v28 = vld [vmem:[%s3259_s3] sm:$0xff]  }
  0x28   : > { %2164 = vmatprep.subr.bf16.mxu0 %v2410_v38  ;;  %v858_v58 = vadd.f32 %v857_v51, %v432_v52  ;;  %2182 = vmatprep.subr.bf16.mxu1 %v2411_v28 }
  0x29   : > { %2183 = vmatpush3.bf16.msra.mxu1 %v2411_v28 }
  0x2a   : > { %v859_v61 = vadd.f32 %v858_v58, %v433_v57  ;;  %2184 = vmatprep.subr.bf16.mxu1 %v2412_v32 }
  0x2b   : > { %2165 = vmatpush3.bf16.msra.mxu0 %v2410_v38  ;;  %v2815_v38 = vsub.s32 0, %v2812_v37 }
  0x2c   : > { %v860_v2 = vadd.f32 %v859_v61, %v434_v62 }
  0x2d   : > { %2185 = vmatpush3.bf16.msra.mxu1 %v2412_v32  ;;  %3304 = vst [vmem:[#allocation11_spill] sm:$0xff] %v2815_v38  ;;  %v2825_v45 = vrot.slane %v2820_v41, %v2815_v38 }
  0x2e   : > { %2167 = vmatmul.mubr.bf16.vlgmr.msra.gmra.mrb[0].mxu0 %v459_v53  ;;  %v861_v11 = vadd.f32 %v860_v2, %v435_v1  ;;  %2338 = vmatprep.subr.bf16.mxu1 %v3268_v33 }
  0x2f   : > { %2170 = vmatprep.mubr.bf16.mxu0 %v460_v56 }
  0x30   : > { %v862_v20 = vadd.f32 %v861_v11, %v436_v12 }
  0x32   : > { %v2803_v21 = vadd.f32 %v862_v20, %v437_v17 }
  0x36   : > { %2171 = vmatmul.mubr.bf16.gmra.mrb[4].mxu0 %v461_v15  ;;  %v388_v15 = vld [vmem:[%s3262_s6] sm:$0xff] }
  0x37   : > { %2174 = vmatprep.mubr.bf16.mxu0 %v462_v16  ;;  %v389_v16 = vld [vmem:[%s3262_s6 + $0x8] sm:$0xff] }
  0x3e   : > { %2175 = vmatmul.mubr.bf16.gmra.mrb[8].mxu0 %v463_v22 }
  0x3f   : > { %2178 = vmatprep.mubr.bf16.mxu0 %v464_v25 }
  0x46   : > { %2179 = vmatmul.mubr.bf16.gmra.mrb[12].mxu0 %v465_v26 }
 0x101   : > { %v2168_v47 = vpop.f32.mrb[0].mxu0 }
 0x102   : > { %v617_v48 = vmul.f32 %v2168_v47, %v2825_v45  ;;  %v548_v51 = vpop.f32.mrb[1].mxu0  ;;  %v2846_v47 = vpack.c.bf16 %v389_v16, %v388_v15  ;;  %v393_v15 = vld [vmem:[%s3262_s6 + $0x28] sm:$0xff] }
 0x103   : > { %v615_v52 = vmul.f32 %v2825_v45, %v548_v51  ;;  %v2169_v53 = vpop.f32.mrb[2].mxu0 }
 0x104   : > { %v637_v56 = vadd.f32 %v2828_v46, %v617_v48  ;;  %v618_v57 = vmul.f32 %v2169_v53, %v2825_v45  ;;  %v551_v58 = vpop.f32.mrb[3].mxu0  ;;  %3305 = vst [vmem:[#allocation12_spill] sm:$0xff] %v2846_v47  ;;  %v390_v53 = vld [vmem:[%s3262_s6 + $0x10] sm:$0xff] }
 0x105   : > { %v635_v61 = vadd.f32 %v2828_v46, %v615_v52  ;;  %v616_v62 = vmul.f32 %v2825_v45, %v551_v58 }
 0x106   : > { %v638_v1 = vadd.f32 %v2828_v46, %v618_v57  ;;  %v653_v11 = vmax.f32 %v637_v56, 0.0  ;;  %v391_v56 = vld [vmem:[%s3262_s6 + $0x18] sm:$0xff] }
 0x107   : > { %v636_v2 = vadd.f32 %v2828_v46, %v616_v62  ;;  %v651_v17 = vmax.f32 %v635_v61, 0.0 }
 0x108   : > { %v654_v12 = vmax.f32 %v638_v1, 0.0  ;;  %v2863_v1 = vpack.c.bf16 %v391_v56, %v390_v53  ;;  %v394_v53 = vld [vmem:[%s3262_s6 + $0x30] sm:$0xff]  ;;  %v395_v56 = vld [vmem:[%s3262_s6 + $0x38] sm:$0xff] }
 0x109   : > { %v652_v20 = vmax.f32 %v636_v2, 0.0  ;;  %v2172_v22 = vpop.f32.mrb[4].mxu0 }
 0x10a   : > { %v668_v25 = vpack.c.bf16 %v654_v12, %v653_v11  ;;  %v621_v26 = vmul.f32 %v2172_v22, %v2825_v45  ;;  %v564_v28 = vpop.f32.mrb[5].mxu0  ;;  %3306 = vst [vmem:[#allocation13_spill] sm:$0xff] %v2863_v1  ;;  %v392_v12 = vld [vmem:[%s3262_s6 + $0x20] sm:$0xff] }
 0x10b   : > { %v619_v32 = vmul.f32 %v2825_v45, %v564_v28  ;;  %v2173_v36 = vpop.f32.mrb[6].mxu0  ;;  %v667_v42 = vpack.c.bf16 %v652_v20, %v651_v17 }
 0x10c   : > { %v641_v48 = vadd.f32 %v2828_v46, %v621_v26  ;;  %v622_v51 = vmul.f32 %v2173_v36, %v2825_v45  ;;  %v567_v52 = vpop.f32.mrb[7].mxu0 }
 0x10d   : > { %v639_v57 = vadd.f32 %v2828_v46, %v619_v32  ;;  %v620_v58 = vmul.f32 %v2825_v45, %v567_v52  ;;  %2186 = vmatprep.mubr.msk.bf16.mxu1 %vm687_vm0, %v667_v42  ;;  %v2875_v42 = vpack.c.bf16 %v393_v15, %v392_v12 }
 0x10e   : > { %v642_v61 = vadd.f32 %v2828_v46, %v622_v51  ;;  %2187 = vmatmul.mubr.msk.bf16.vlgmr.msra.gmra.mrb[0].mxu1 %vm687_vm0, %v668_v25  ;;  %v657_v2 = vmax.f32 %v641_v48, 0.0 }
 0x10f   : > { %v640_v62 = vadd.f32 %v2828_v46, %v620_v58  ;;  %2340 = vmatpush3.bf16.msra.mxu1 %v2846_v47  ;;  %v655_v16 = vmax.f32 %v639_v57, 0.0  ;;  %3307 = vst [vmem:[#allocation14_spill] sm:$0xff] %v2875_v42 }
 0x110   : > { %v658_v11 = vmax.f32 %v642_v61, 0.0  ;;  %2341 = vmatprep.subr.bf16.mxu1 %v3268_v33  ;;  %v864_v61 = vrot.slane %v2803_v21, 4 }
 0x111   : > { %v656_v17 = vmax.f32 %v640_v62, 0.0  ;;  %v2176_v20 = vpop.f32.mrb[8].mxu0 }
 0x112   : > { %v670_v22 = vpack.c.bf16 %v658_v11, %v657_v2  ;;  %v625_v25 = vmul.f32 %v2176_v20, %v2825_v45  ;;  %v580_v26 = vpop.f32.mrb[9].mxu0  ;;  %v2894_v11 = vpack.c.bf16 %v395_v56, %v394_v53 }
 0x113   : > { %v669_v28 = vpack.c.bf16 %v656_v17, %v655_v16  ;;  %v623_v32 = vmul.f32 %v2825_v45, %v580_v26  ;;  %2343 = vmatpush3.bf16.msra.mxu1 %v2863_v1  ;;  %v2177_v36 = vpop.f32.mrb[10].mxu0  ;;  %v396_v16 = vld [vmem:[%s3262_s6 + $0x40] sm:$0xff]  ;;  %v397_v17 = vld [vmem:[%s3262_s6 + $0x48] sm:$0xff]  ;;  %v865_v26 = vadd.f32 %v864_v61, %v2803_v21  ;;  %v398_v21 = vld [vmem:[%s3262_s6 + $0x50] sm:$0xff] }
 0x114   : > { %v645_v48 = vadd.f32 %v2828_v46, %v625_v25  ;;  %v626_v51 = vmul.f32 %v2177_v36, %v2825_v45  ;;  %v583_v52 = vpop.f32.mrb[11].mxu0  ;;  %2344 = vmatprep.subr.bf16.mxu1 %v3268_v33  ;;  %3308 = vst [vmem:[#allocation15_spill] sm:$0xff] %v2894_v11  ;;  %v2907_v53 = vpack.c.bf16 %v397_v17, %v396_v16  ;;  %v399_v61 = vld [vmem:[%s3262_s6 + $0x58] sm:$0xff] }
 0x115   : > { %v643_v57 = vadd.f32 %v2828_v46, %v623_v32  ;;  %v624_v58 = vmul.f32 %v2825_v45, %v583_v52  ;;  %2190 = vmatprep.mubr.msk.bf16.mxu1 %vm687_vm0, %v669_v28  ;;  %v2925_v17 = vpack.c.bf16 %v399_v61, %v398_v21  ;;  %v404_v61 = vld [vmem:[%s3263_s7] sm:$0xff] }
 0x116   : > { %v646_v62 = vadd.f32 %v2828_v46, %v626_v51  ;;  %2191 = vmatmul.mubr.msk.bf16.gmra.mrb[4].mxu1 %vm687_vm0, %v670_v22  ;;  %v661_v12 = vmax.f32 %v645_v48, 0.0  ;;  %3309 = vst [vmem:[#allocation16_spill] sm:$0xff] %v2907_v53 }
 0x117   : > { %v644_v2 = vadd.f32 %v2828_v46, %v624_v58  ;;  %2346 = vmatpush3.bf16.msra.mxu1 %v2875_v42  ;;  %v659_v20 = vmax.f32 %v643_v57, 0.0  ;;  %3310 = vst [vmem:[#allocation17_spill] sm:$0xff] %v2925_v17 }
 0x118   : > { %v662_v15 = vmax.f32 %v646_v62, 0.0  ;;  %2347 = vmatprep.subr.bf16.mxu1 %v3268_v33 }
 0x119   : > { %v660_v22 = vmax.f32 %v644_v2, 0.0  ;;  %v2180_v25 = vpop.f32.mrb[12].mxu0 }
 0x11a   : > { %v672_v28 = vpack.c.bf16 %v662_v15, %v661_v12  ;;  %v629_v32 = vmul.f32 %v2180_v25, %v2825_v45  ;;  %v596_v36 = vpop.f32.mrb[13].mxu0  ;;  %v866_v12 = vrot.slane %v865_v26, 2  ;;  %v401_v25 = vld [vmem:[%s3262_s6 + $0x68] sm:$0xff] }
 0x11b   : > { %v671_v48 = vpack.c.bf16 %v660_v22, %v659_v20  ;;  %v627_v51 = vmul.f32 %v2825_v45, %v596_v36  ;;  %2349 = vmatpush3.bf16.msra.mxu1 %v2894_v11  ;;  %v2181_v52 = vpop.f32.mrb[14].mxu0 }
 0x11c   : > { %v649_v56 = vadd.f32 %v2828_v46, %v629_v32  ;;  %v630_v57 = vmul.f32 %v2181_v52, %v2825_v45  ;;  %v599_v58 = vpop.f32.mrb[15].mxu0  ;;  %2350 = vmatprep.subr.bf16.mxu1 %v3268_v33  ;;  %v867_v36 = vadd.f32 %v866_v12, %v865_v26  ;;  %v402_v52 = vld [vmem:[%s3262_s6 + $0x70] sm:$0xff] }
 0x11d   : > { %v647_v62 = vadd.f32 %v2828_v46, %v627_v51  ;;  %v628_v2 = vmul.f32 %v2825_v45, %v599_v58  ;;  %2194 = vmatprep.mubr.msk.bf16.mxu1 %vm687_vm0, %v671_v48  ;;  %v400_v45 = vld [vmem:[%s3262_s6 + $0x60] sm:$0xff]  ;;  %v3266_v58 = vmov 0.0  }
 0x11e   : > { %v650_v15 = vadd.f32 %v2828_v46, %v630_v57  ;;  %2195 = vmatmul.mubr.msk.bf16.gmra.mrb[8].mxu1 %vm687_vm0, %v672_v28  ;;  %v665_v20 = vmax.f32 %v649_v56, 0.0  ;;  %v2935_v51 = vpack.c.bf16 %v401_v25, %v400_v45  ;;  %v403_v56 = vld [vmem:[%s3262_s6 + $0x78] sm:$0xff]  ;;  %v868_v26 = vrot.slane %v867_v36, 1 }
 0x11f   : > { %v648_v16 = vadd.f32 %v2828_v46, %v628_v2  ;;  %2352 = vmatpush3.bf16.msra.mxu1 %v2907_v53  ;;  %v663_v32 = vmax.f32 %v647_v62, 0.0  ;;  %v2947_v57 = vpack.c.bf16 %v403_v56, %v402_v52  ;;  %v405_v62 = vld [vmem:[%s3263_s7 + $0x8] sm:$0xff] }
 0x120   : > { %v666_v22 = vmax.f32 %v650_v15, 0.0  ;;  %2353 = vmatprep.subr.bf16.mxu1 %v3268_v33  ;;  %3311 = vst [vmem:[#allocation18_spill] sm:$0xff] %v2935_v51  ;;  %v869_v21 = vadd.f32 %v868_v26, %v867_v36  ;;  %v2962_v2 = vpack.c.bf16 %v405_v62, %v404_v61  ;;  %v2974_v61 = vld [vmem:[%s3264_s8 + $0x8] sm:$0xff] }
 0x121   : > { %v664_v28 = vmax.f32 %v648_v16, 0.0  ;;  %3312 = vst [vmem:[#allocation19_spill] sm:$0xff] %v2947_v57  ;;  %v3293_v47 = vrot.slane %v2974_v61, 1 }
 0x122   : > { %v674_v46 = vpack.c.bf16 %v666_v22, %v665_v20  ;;  %3313 = vst [vmem:[#allocation20_spill] sm:$0xff] %v2962_v2 }
 0x123   : > { %v673_v48 = vpack.c.bf16 %v664_v28, %v663_v32  ;;  %2355 = vmatpush3.bf16.msra.mxu1 %v2925_v17 }
 0x124   : > { %2356 = vmatprep.subr.bf16.mxu1 %v3268_v33 }
 0x125   : > { %2198 = vmatprep.mubr.msk.bf16.mxu1 %vm687_vm0, %v673_v48 }
 0x126   : > { %2199 = vmatmul.mubr.msk.bf16.gmra.mrb[12].mxu1 %vm687_vm0, %v674_v46 }
 0x127   : > { %2358 = vmatpush3.bf16.msra.mxu1 %v2935_v51  ;;  %2234 = vmatprep.mubr.msk.f32.mxu1 %vm2577_vm1, %v3266_v58  ;;  %v2414_v51 = vld [vmem:[%s3260_s4 + $0x8] sm:$0xff]  }
 0x128   : > { %2359 = vmatprep.subr.bf16.mxu1 %v3268_v33 }
 0x12b   : > { %2361 = vmatpush3.bf16.msra.mxu1 %v2947_v57  ;;  %v2413_v57 = vld [vmem:[%s3260_s4] sm:$0xff]  }
 0x12c   : > { %2362 = vmatprep.subr.bf16.mxu1 %v3268_v33  ;;  %2244 = vmatprep.subr.bf16.mxu0 %v2413_v57 }
 0x12d   : > { %2245 = vmatpush3.bf16.msra.mxu0 %v2413_v57  ;;  %v2418_v57 = vld [vmem:[%s3260_s4 + $0x28] sm:$0xff]  }
 0x12e   : > { %2235 = vmatmul.mubr.f32.vlgmr.msra.gmra.mrb[16].mxu1 %v869_v21  ;;  %2246 = vmatprep.subr.bf16.mxu0 %v2414_v51 }
 0x12f   : > { %2241 = vmatprep.mubr.msk.f32.mxu1 %vm2577_vm1, %v3266_v58  ;;  %2364 = vmatpush3.bf16.msra.mxu1 %v2962_v2 }
 0x131   : > { %2247 = vmatpush3.bf16.msra.mxu0 %v2414_v51  ;;  %v2419_v51 = vld [vmem:[%s3260_s4 + $0x30] sm:$0xff]  }
 0x1e1   : > { %v2188_v12 = vpop.f32.mrb[0].mxu1 }
 0x1e2   : > { %v746_v15 = vpop.f32.mrb[1].mxu1 }
 0x1e3   : > { %v2189_v16 = vpop.f32.mrb[2].mxu1 }
 0x1e4   : > { %v749_v20 = vpop.f32.mrb[3].mxu1 }
 0x1e9   : > { %v2192_v22 = vpop.f32.mrb[4].mxu1 }
 0x1ea   : > { %v762_v45 = vpop.f32.mrb[5].mxu1 }
 0x1eb   : > { %v2193_v25 = vpop.f32.mrb[6].mxu1 }
 0x1ec   : > { %v765_v32 = vpop.f32.mrb[7].mxu1 }
 0x1f1   : > { %v2196_v28 = vpop.f32.mrb[8].mxu1 }
 0x1f2   : > { %v778_v36 = vpop.f32.mrb[9].mxu1 }
 0x1f3   : > { %v2197_v46 = vpop.f32.mrb[10].mxu1 }
 0x1f4   : > { %v781_v48 = vpop.f32.mrb[11].mxu1 }
 0x1f9   : > { %v2200_v52 = vpop.f32.mrb[12].mxu1 }
 0x1fa   : > { %v2965_v56 = vpop.f32.mrb[13].mxu1 }
 0x1fb   : > { %v2967_v26 = vpop.f32.mrb[14].mxu1 }
 0x1fc   : > { %v2969_v21 = vpop.f32.mrb[15].mxu1 }
 0x201   : > { %v936_v62 = vpop.f32.mrb[16].mxu1 }
 0x202   : > { %v937_v58 = vadd.f32 %v936_v62, %v2974_v61  ;;  %v2236_v33 = vpop.f32.mrb[17].mxu1  ;;  %v2415_v62 = vld [vmem:[%s3260_s4 + $0x10] sm:$0xff]  }
 0x203   : > { %2248 = vmatprep.subr.bf16.mxu0 %v2415_v62  ;;  %v2416_v33 = vld [vmem:[%s3260_s4 + $0x18] sm:$0xff]  }
 0x204   : > { %v940_v2 = vmax.f32 %v937_v58, 0.0  ;;  %2249 = vmatpush3.bf16.msra.mxu0 %v2415_v62  ;;  %v2417_v58 = vld [vmem:[%s3260_s4 + $0x20] sm:$0xff]   ;;  %v811_v62 = vsub.s32 2, %v2812_v37 }
 0x205   : > { %2250 = vmatprep.subr.bf16.mxu0 %v2416_v33 }
 0x206   : > { %2242 = vmatmul.mubr.msk.f32.vlgmr.msra.gmra.mrb[18].mxu1 %vm944_vm2, %v940_v2  ;;  %v2420_v2 = vld [vmem:[%s3260_s4 + $0x38] sm:$0xff]  }
 0x208   : > { %2251 = vmatpush3.bf16.msra.mxu0 %v2416_v33  ;;  %v812_v33 = vrot.slane %v2820_v41, %v811_v62 }
 0x209   : > { %2252 = vmatprep.subr.bf16.mxu0 %v2417_v58 }
 0x20a   : > { %v815_v17 = vmul.f32 %v2188_v12, %v812_v33  ;;  %v813_v11 = vmul.f32 %v812_v33, %v746_v15  ;;  %v816_v42 = vmul.f32 %v2189_v16, %v812_v33  ;;  %v819_v1 = vmul.f32 %v2192_v22, %v812_v33 }
 0x20b   : > { %v817_v3 = vmul.f32 %v812_v33, %v762_v45  ;;  %v820_v10 = vmul.f32 %v2193_v25, %v812_v33  ;;  %v823_v63 = vmul.f32 %v2196_v28, %v812_v33  ;;  %v824_v0 = vmul.f32 %v2197_v46, %v812_v33 }
 0x20c   : > { %2253 = vmatpush3.bf16.msra.mxu0 %v2417_v58  ;;  %v831_v58 = vsub.s32 3, %v2812_v37  ;;  %v822_v59 = vmul.f32 %v812_v33, %v781_v48  ;;  %v827_v54 = vmul.f32 %v2200_v52, %v812_v33 }
 0x20d   : > { %2254 = vmatprep.subr.bf16.mxu0 %v2418_v57 }
 0x20e   : > { %v832_v53 = vrot.slane %v2820_v41, %v831_v58 }
 0x210   : > { %2255 = vmatpush3.bf16.msra.mxu0 %v2418_v57  ;;  %v814_v57 = vmul.f32 %v812_v33, %v749_v20  ;;  %v835_v60 = vadd.f32 %v832_v53, %v815_v17  ;;  %v833_v62 = vadd.f32 %v832_v53, %v813_v11  ;;  %v836_v12 = vadd.f32 %v832_v53, %v816_v42 }
 0x211   : > { %2256 = vmatprep.subr.bf16.mxu0 %v2419_v51  ;;  %v839_v58 = vadd.f32 %v832_v53, %v819_v1  ;;  %v837_v20 = vadd.f32 %v832_v53, %v817_v3  ;;  %v840_v22 = vadd.f32 %v832_v53, %v820_v10  ;;  %v843_v25 = vadd.f32 %v832_v53, %v823_v63 }
 0x212   : > { %v834_v55 = vadd.f32 %v832_v53, %v814_v57  ;;  %v844_v28 = vadd.f32 %v832_v53, %v824_v0  ;;  %v847_v17 = vadd.f32 %v832_v53, %v827_v54  ;;  %v825_v11 = vmul.f32 %v812_v33, %v2965_v56 }
 0x213   : > { %v828_v42 = vmul.f32 %v2967_v26, %v812_v33  ;;  %v826_v1 = vmul.f32 %v812_v33, %v2969_v21 }
 0x214   : > { %2257 = vmatpush3.bf16.msra.mxu0 %v2419_v51  ;;  %v818_v51 = vmul.f32 %v812_v33, %v765_v32 }
 0x215   : > { %2258 = vmatprep.subr.bf16.mxu0 %v2420_v2  ;;  %v848_v54 = vadd.f32 %v832_v53, %v828_v42 }
 0x216   : > { %v838_v45 = vadd.f32 %v832_v53, %v818_v51 }
 0x218   : > { %2259 = vmatpush3.bf16.msra.mxu0 %v2420_v2  ;;  %v821_v2 = vmul.f32 %v812_v33, %v778_v36  ;;  %v842_v36 = vadd.f32 %v832_v53, %v822_v59 }
 0x21a   : > { %v841_v32 = vadd.f32 %v832_v53, %v821_v2 }
 0x2d9   : > { %v1014_v37 = vpop.f32.mrb[18].mxu1 }
 0x2da   : > { %v1015_v15 = vadd.f32 %v1014_v37, %v3293_v47  ;;  %v2243_v16 = vpop.f32.mrb[19].mxu1 }
 0x2dc   : > { %v1021_v46 = vrot.slane %v1015_v15, %v2815_v38  ;;  %v845_v15 = vadd.f32 %v832_v53, %v825_v11  ;;  %v846_v38 = vadd.f32 %v832_v53, %v826_v1 }
 0x2de   : > { %v1022_v48 = vadd.f32 %v1021_v46, %v833_v62  ;;  %v1023_v52 = vadd.f32 %v1021_v46, %v834_v55  ;;  %v1024_v37 = vadd.f32 %v1021_v46, %v835_v60  ;;  %v1025_v57 = vadd.f32 %v1021_v46, %v836_v12 }
 0x2df   : > { %v1026_v3 = vadd.f32 %v1021_v46, %v837_v20  ;;  %v1027_v10 = vadd.f32 %v1021_v46, %v838_v45  ;;  %v1028_v51 = vadd.f32 %v1021_v46, %v839_v58  ;;  %v1029_v63 = vadd.f32 %v1021_v46, %v840_v22 }
 0x2e0   : > { %v2002_v2 = vmul.f32 -1.442695, %v1022_v48  ;;  %v2003_v0 = vmul.f32 -1.442695, %v1023_v52  ;;  %v2004_v59 = vmul.f32 -1.442695, %v1024_v37  ;;  %v1030_v16 = vadd.f32 %v1021_v46, %v841_v32 }
 0x2e1   : > { %v2005_v47 = vmul.f32 -1.442695, %v1025_v57  ;;  %v1031_v56 = vadd.f32 %v1021_v46, %v842_v36  ;;  %v2006_v26 = vmul.f32 -1.442695, %v1026_v3  ;;  %v2007_v21 = vmul.f32 -1.442695, %v1027_v10 }
 0x2e2   : > { %2423 = vpow2.f32 %v2002_v2  ;;  %v2008_v55 = vmul.f32 -1.442695, %v1028_v51  ;;  %v1032_v60 = vadd.f32 %v1021_v46, %v843_v25  ;;  %v1033_v33 = vadd.f32 %v1021_v46, %v844_v28 }
 0x2e3   : > { %2425 = vpow2.f32 %v2003_v0  ;;  %v1034_v62 = vadd.f32 %v1021_v46, %v845_v15  ;;  %v1035_v12 = vadd.f32 %v1021_v46, %v846_v38  ;;  %v1036_v58 = vadd.f32 %v1021_v46, %v847_v17 }
 0x2e4   : > { %2427 = vpow2.f32 %v2004_v59  ;;  %v2009_v20 = vmul.f32 -1.442695, %v1029_v63  ;;  %v1037_v22 = vadd.f32 %v1021_v46, %v848_v54  ;;  %v2010_v45 = vmul.f32 -1.442695, %v1030_v16 }
 0x2e5   : > { %2429 = vpow2.f32 %v2005_v47  ;;  %v2011_v32 = vmul.f32 -1.442695, %v1031_v56  ;;  %v2012_v53 = vmul.f32 -1.442695, %v1032_v60  ;;  %v2013_v36 = vmul.f32 -1.442695, %v1033_v33 }
 0x2e6   : > { %2431 = vpow2.f32 %v2006_v26  ;;  %v2014_v11 = vmul.f32 -1.442695, %v1034_v62  ;;  %v3015_v15 = vsub.f32 %v2664_v4, %v2670_v6  ;;  %v3019_v26 = vsub.f32 %v2667_v5, %v2673_v7 }
 0x2e7   : > { %2433 = vpow2.f32 %v2007_v21  ;;  %v3023_v33 = vsub.f32 %v2676_v8, %v2679_v9  ;;  %v3027_v4 = vsub.f32 %v2689_v13, %v2692_v14  ;;  %v3031_v5 = vsub.f32 %v2697_v18, %v2700_v19 }
 0x2e8   : > { %2435 = vpow2.f32 %v2008_v55  ;;  %v2015_v55 = vmul.f32 -1.442695, %v1035_v12  ;;  %v3040_v13 = vsub.f32 %v2716_v27, %v2725_v30  ;;  %v3045_v18 = vsub.f32 %v2722_v29, %v2728_v31 }
 0x2e9   : > { %2437 = vpow2.f32 %v2009_v20  ;;  %v3055_v27 = vsub.f32 %v2744_v39, %v2747_v40 }
 0x2ea   : > { %2439 = vpow2.f32 %v2010_v45  ;;  %v2016_v45 = vmul.f32 -1.442695, %v1036_v58 }
 0x2eb   : > { %2441 = vpow2.f32 %v2011_v32 }
 0x2ec   : > { %v2424_v25 = vpop.eup %2423  ;;  %2443 = vpow2.f32 %v2012_v53  ;;  %v2017_v53 = vmul.f32 -1.442695, %v1037_v22  ;;  %v3049_v22 = vsub.f32 %v2733_v34, %v2736_v35 }
 0x2ed   : > { %v2426_v28 = vpop.eup %2425  ;;  %v1086_v42 = vadd.f32 1.0, %v2424_v25  ;;  %2445 = vpow2.f32 %v2013_v36  ;;  %v3036_v36 = vsub.f32 %v2708_v23, %v2711_v24 }
 0x2ee   : > { %v2428_v38 = vpop.eup %2427  ;;  %v1087_v47 = vadd.f32 1.0, %v2426_v28  ;;  %2447 = vpow2.f32 %v2014_v11 }
 0x2ef   : > { %v2430_v46 = vpop.eup %2429  ;;  %v1088_v17 = vadd.f32 1.0, %v2428_v38  ;;  %2449 = vrcp.f32 %v1086_v42 }
 0x2f0   : > { %v2432_v1 = vpop.eup %2431  ;;  %2451 = vrcp.f32 %v1087_v47  ;;  %v1089_v48 = vadd.f32 1.0, %v2430_v46 }
 0x2f1   : > { %v2434_v52 = vpop.eup %2433  ;;  %2453 = vrcp.f32 %v1088_v17  ;;  %v1090_v37 = vadd.f32 1.0, %v2432_v1 }
 0x2f2   : > { %v2436_v57 = vpop.eup %2435  ;;  %2455 = vrcp.f32 %v1089_v48  ;;  %v1091_v3 = vadd.f32 1.0, %v2434_v52 }
 0x2f3   : > { %v2438_v10 = vpop.eup %2437  ;;  %2457 = vrcp.f32 %v1090_v37  ;;  %v1092_v51 = vadd.f32 1.0, %v2436_v57  ;;  %v3069_v37 = vsub.f32 %v2762_v49, %v2765_v50 }
 0x2f4   : > { %v2440_v63 = vpop.eup %2439  ;;  %2459 = vrcp.f32 %v1091_v3  ;;  %v1093_v2 = vadd.f32 1.0, %v2438_v10 }
 0x2f5   : > { %v2442_v0 = vpop.eup %2441  ;;  %2461 = vrcp.f32 %v1092_v51  ;;  %v1094_v59 = vadd.f32 1.0, %v2440_v63 }
 0x2f6   : > { %v2444_v16 = vpop.eup %2443  ;;  %2463 = vrcp.f32 %v1093_v2  ;;  %v1095_v54 = vadd.f32 1.0, %v2442_v0 }
 0x2f7   : > { %v2446_v56 = vpop.eup %2445  ;;  %2465 = vrcp.f32 %v1094_v59  ;;  %v1096_v21 = vadd.f32 1.0, %v2444_v16 }
 0x2f8   : > { %v2448_v60 = vpop.eup %2447  ;;  %2467 = vrcp.f32 %v1095_v54  ;;  %v1097_v62 = vadd.f32 1.0, %v2446_v56 }
 0x2f9   : > { %v2450_v20 = vpop.eup %2449  ;;  %2469 = vrcp.f32 %v1096_v21  ;;  %v1098_v46 = vadd.f32 1.0, %v2448_v60 }
 0x2fa   : > { %v2452_v32 = vpop.eup %2451  ;;  %v1134_v12 = vmul.f32 %v2450_v20, %v3015_v15  ;;  %2471 = vrcp.f32 %v1097_v62 }
 0x2fb   : > { %v2454_v8 = vpop.eup %2453  ;;  %v1135_v58 = vmul.f32 %v2452_v32, %v3019_v26  ;;  %2473 = vpow2.f32 %v2015_v55 }
 0x2fc   : > { %v2456_v11 = vpop.eup %2455  ;;  %v1136_v25 = vmul.f32 %v2454_v8, %v3023_v33  ;;  %v1150_v23 = vadd.f32 %v1134_v12, %v2670_v6  ;;  %2475 = vpow2.f32 %v2016_v45 }
 0x2fd   : > { %v2458_v28 = vpop.eup %2457  ;;  %v1151_v42 = vadd.f32 %v1135_v58, %v2673_v7  ;;  %v1137_v38 = vmul.f32 %v2456_v11, %v3027_v4  ;;  %2477 = vpow2.f32 %v2017_v53  ;;  %v3065_v7 = vsub.f32 %v2752_v43, %v2755_v44 }
 0x2fe   : > { %v2460_v29 = vpop.eup %2459  ;;  %v1152_v47 = vadd.f32 %v1136_v25, %v2679_v9  ;;  %v1138_v34 = vmul.f32 %v2458_v28, %v3031_v5  ;;  %2479 = vrcp.f32 %v1098_v46  ;;  %v3314_v28 = vld [vmem:[#allocation3_spill] sm:$0xff] }
 0x2ff   : > { %v2462_v17 = vpop.eup %2461  ;;  %v1186_v1 = vpack.c.bf16 %v1151_v42, %v1150_v23  ;;  %v1576_v6 = vadd.f32 %v1151_v42, %v1150_v23  ;;  %v1153_v48 = vadd.f32 %v1137_v38, %v2692_v14  ;;  %v1139_v39 = vmul.f32 %v2460_v29, %v3036_v36  ;;  %v3315_v42 = vld [vmem:[#allocation2_spill] sm:$0xff] }
 0x300   : > { %v2464_v52 = vpop.eup %2463  ;;  %v1154_v9 = vadd.f32 %v1138_v34, %v2700_v19  ;;  %v1140_v57 = vmul.f32 %v2462_v17, %v3040_v13  ;;  %v3317_v34 = vld [vmem:[#allocation4_spill] sm:$0xff] }
 0x301   : > { %v2466_v3 = vpop.eup %2465  ;;  %2260 = vmatprep.mubr.bf16.mxu0 %v1186_v1  ;;  %v1577_v10 = vadd.f32 %v1576_v6, %v1152_v47  ;;  %v1187_v51 = vpack.c.bf16 %v1153_v48, %v1152_v47  ;;  %v1155_v14 = vadd.f32 %v1139_v39, %v2711_v24  ;;  %v1141_v63 = vmul.f32 %v2464_v52, %v3045_v18  ;;  %v3316_v47 = vld [vmem:[#allocation5_spill] sm:$0xff]  ;;  %v3318_v1 = vld [vmem:[#allocation7_spill] sm:$0xff]  ;;  %v3319_v6 = vld [vmem:[#allocation6_spill] sm:$0xff] }
 0x302   : > { %v2468_v2 = vpop.eup %2467  ;;  %v1156_v43 = vadd.f32 %v1140_v57, %v2725_v30  ;;  %v1142_v0 = vmul.f32 %v2466_v3, %v3049_v22  ;;  %v3321_v57 = vld [vmem:[#allocation8_spill] sm:$0xff] }
 0x303   : > { %v2470_v49 = vpop.eup %2469  ;;  %2261 = vmatmul.mubr.bf16.vlgmr.msra.gmra.mrb[16].mxu0 %v1187_v51  ;;  %v1188_v59 = vpack.c.bf16 %v1155_v14, %v1154_v9  ;;  %v1578_v19 = vadd.f32 %v1577_v10, %v1153_v48  ;;  %v1157_v16 = vadd.f32 %v1141_v63, %v2728_v31  ;;  %v1143_v54 = vmul.f32 %v2468_v2, %v3055_v27 }
 0x304   : > { %v2472_v56 = vpop.eup %2471  ;;  %v1158_v21 = vadd.f32 %v1142_v0, %v2736_v35  ;;  %v1144_v24 = vmul.f32 %v2470_v49, %v3065_v7  ;;  %v3096_v48 = vsub.f32 %v3319_v6, %v3318_v1 }
 0x305   : > { %v2474_v55 = vpop.eup %2473  ;;  %2264 = vmatprep.mubr.bf16.mxu0 %v1188_v59  ;;  %v1579_v60 = vadd.f32 %v1578_v19, %v1154_v9  ;;  %v1189_v30 = vpack.c.bf16 %v1157_v16, %v1156_v43  ;;  %v1159_v62 = vadd.f32 %v1143_v54, %v2747_v40  ;;  %v1145_v20 = vmul.f32 %v2472_v56, %v3069_v37  ;;  %v3320_v9 = vld [vmem:[#allocation9_spill] sm:$0xff] }
 0x306   : > { %v1160_v45 = vadd.f32 %v1144_v24, %v2755_v44  ;;  %v1099_v32 = vadd.f32 1.0, %v2474_v55  ;;  %v2476_v12 = vpop.eup %2475  ;;  %v3087_v40 = vsub.f32 %v3315_v42, %v3314_v28  ;;  %v3100_v3 = vsub.f32 %v3321_v57, %v3320_v9 }
 0x307   : > { %v1580_v31 = vadd.f32 %v1579_v60, %v1155_v14  ;;  %v1190_v53 = vpack.c.bf16 %v1159_v62, %v1158_v21  ;;  %v1161_v8 = vadd.f32 %v1145_v20, %v2765_v50  ;;  %v2478_v58 = vpop.eup %2477  ;;  %v1100_v35 = vadd.f32 1.0, %v2476_v12  ;;  %v2421_v60 = vld [vmem:[%s3261_s5] sm:$0xff]  }
 0x308   : > { %2481 = vrcp.f32 %v1099_v32  ;;  %v1101_v23 = vadd.f32 1.0, %v2478_v58  ;;  %v2480_v44 = vpop.eup %2479  ;;  %v3091_v50 = vsub.f32 %v3317_v34, %v3316_v47  ;;  %2276 = vmatprep.subr.bf16.mxu1 %v2421_v60  ;;  %v3323_v20 = vld [vmem:[#allocation10_spill] sm:$0xff] }
 0x309   : > { %v1581_v11 = vadd.f32 %v1580_v31, %v1156_v43  ;;  %v1191_v25 = vpack.c.bf16 %v1161_v8, %v1160_v45  ;;  %2483 = vrcp.f32 %v1100_v35  ;;  %v1146_v17 = vmul.f32 %v2480_v44, %v3087_v40  ;;  %2277 = vmatpush3.bf16.msra.mxu1 %v2421_v60 }
 0x30a   : > { %2485 = vrcp.f32 %v1101_v23  ;;  %v1361_v32 = vsub.s32 5, %v3323_v20 }
 0x30b   : > { %2265 = vmatmul.mubr.bf16.gmra.mrb[20].mxu0 %v1189_v30  ;;  %v1582_v38 = vadd.f32 %v1581_v11, %v1157_v16  ;;  %v1162_v14 = vadd.f32 %v1146_v17, %v3314_v28  ;;  %v2422_v30 = vld [vmem:[%s3261_s5 + $0x8] sm:$0xff]  }
 0x30c   : > { %2268 = vmatprep.mubr.bf16.mxu0 %v1190_v53  ;;  %2278 = vmatprep.subr.bf16.mxu1 %v2422_v30  ;;  %v3124_v31 = vrot.slane %v2820_v41, %v1361_v32  ;;  %v3325_v32 = vld [vmem:[#allocation13_spill] sm:$0xff] }
 0x30d   : > { %v1583_v29 = vadd.f32 %v1582_v38, %v1158_v21  ;;  %2279 = vmatpush3.bf16.msra.mxu1 %v2422_v30 }
 0x30f   : > { %v1584_v46 = vadd.f32 %v1583_v29, %v1159_v62  ;;  %v3322_v62 = vmov 0.0|0.0  }
 0x310   : > { %2365 = vmatprep.subr.bf16.mxu1 %v3322_v62 }
 0x311   : > { %v1585_v39 = vadd.f32 %v1584_v46, %v1160_v45  ;;  %v1341_v45 = vsub.s32 4, %v3323_v20 }
 0x312   : > { %v2482_v52 = vpop.eup %2481 }
 0x313   : > { %2269 = vmatmul.mubr.bf16.gmra.mrb[24].mxu0 %v1191_v25  ;;  %v1586_v10 = vadd.f32 %v1585_v39, %v1161_v8  ;;  %v1147_v51 = vmul.f32 %v2482_v52, %v3091_v50  ;;  %v2484_v63 = vpop.eup %2483  ;;  %v3121_v12 = vrot.slane %v2820_v41, %v1341_v45 }
 0x314   : > { %v2486_v2 = vpop.eup %2485  ;;  %v1148_v49 = vmul.f32 %v2484_v63, %v3096_v48 }
 0x315   : > { %v1163_v43 = vadd.f32 %v1147_v51, %v3316_v47  ;;  %v1587_v0 = vadd.f32 %v1586_v10, %v1162_v14  ;;  %v1149_v59 = vmul.f32 %v2486_v2, %v3100_v3 }
 0x316   : > { %v1164_v54 = vadd.f32 %v1148_v49, %v3318_v1  ;;  %v3324_v49 = vld [vmem:[#allocation12_spill] sm:$0xff] }
 0x317   : > { %v1192_v19 = vpack.c.bf16 %v1163_v43, %v1162_v14  ;;  %v1588_v16 = vadd.f32 %v1587_v0, %v1163_v43  ;;  %v1165_v56 = vadd.f32 %v1149_v59, %v3320_v9 }
 0x319   : > { %2272 = vmatprep.mubr.bf16.mxu0 %v1192_v19  ;;  %v1589_v21 = vadd.f32 %v1588_v16, %v1164_v54  ;;  %v1193_v24 = vpack.c.bf16 %v1165_v56, %v1164_v54 }
 0x31b   : > { %v3109_v55 = vadd.f32 %v1589_v21, %v1165_v56  ;;  %2273 = vmatmul.mubr.bf16.gmra.mrb[28].mxu0 %v1193_v24 }
 0x3d6   : > { %v2262_v53 = vpop.f32.mrb[16].mxu0 }
 0x3d7   : > { %v1345_v8 = vmul.f32 %v2262_v53, %v3121_v12  ;;  %v1276_v58 = vpop.f32.mrb[17].mxu0 }
 0x3d8   : > { %v1343_v35 = vmul.f32 %v3121_v12, %v1276_v58  ;;  %v2263_v11 = vpop.f32.mrb[18].mxu0 }
 0x3d9   : > { %v1365_v25 = vadd.f32 %v3124_v31, %v1345_v8  ;;  %v1346_v23 = vmul.f32 %v2263_v11, %v3121_v12  ;;  %v1279_v28 = vpop.f32.mrb[19].mxu0 }
 0x3da   : > { %v1363_v42 = vadd.f32 %v3124_v31, %v1343_v35  ;;  %v1344_v38 = vmul.f32 %v3121_v12, %v1279_v28 }
 0x3db   : > { %v1366_v44 = vadd.f32 %v3124_v31, %v1346_v23  ;;  %v1381_v29 = vmax.f32 %v1365_v25, 0.0 }
 0x3dc   : > { %v1364_v41 = vadd.f32 %v3124_v31, %v1344_v38  ;;  %v1379_v34 = vmax.f32 %v1363_v42, 0.0  ;;  %v3326_v42 = vld [vmem:[#allocation14_spill] sm:$0xff] }
 0x3dd   : > { %v1382_v47 = vmax.f32 %v1366_v44, 0.0 }
 0x3de   : > { %v1380_v46 = vmax.f32 %v1364_v41, 0.0  ;;  %v2266_v17 = vpop.f32.mrb[20].mxu0  ;;  %v1591_v41 = vrot.slane %v3109_v55, 4 }
 0x3df   : > { %v1396_v1 = vpack.c.bf16 %v1382_v47, %v1381_v29  ;;  %v1349_v6 = vmul.f32 %v2266_v17, %v3121_v12  ;;  %v1292_v39 = vpop.f32.mrb[21].mxu0 }
 0x3e0   : > { %v1395_v52 = vpack.c.bf16 %v1380_v46, %v1379_v34  ;;  %v1347_v9 = vmul.f32 %v3121_v12, %v1292_v39  ;;  %v2267_v57 = vpop.f32.mrb[22].mxu0  ;;  %v3327_v39 = vld [vmem:[#allocation15_spill] sm:$0xff] }
 0x3e1   : > { %v1369_v10 = vadd.f32 %v3124_v31, %v1349_v6  ;;  %v1350_v51 = vmul.f32 %v2267_v57, %v3121_v12  ;;  %v1295_v14 = vpop.f32.mrb[23].mxu0  ;;  %v1592_v57 = vadd.f32 %v1591_v41, %v3109_v55 }
 0x3e2   : > { %v1367_v63 = vadd.f32 %v3124_v31, %v1347_v9  ;;  %v1348_v2 = vmul.f32 %v3121_v12, %v1295_v14  ;;  %2280 = vmatprep.mubr.msk.bf16.mxu1 %vm687_vm0, %v1395_v52 }
 0x3e3   : > { %v1370_v43 = vadd.f32 %v3124_v31, %v1350_v51  ;;  %2281 = vmatmul.mubr.msk.bf16.vlgmr.msra.gmra.mrb[20].mxu1 %vm687_vm0, %v1396_v1  ;;  %v1385_v59 = vmax.f32 %v1369_v10, 0.0  ;;  %v1593_v55 = vrot.slane %v1592_v57, 2 }
 0x3e4   : > { %v1368_v0 = vadd.f32 %v3124_v31, %v1348_v2  ;;  %2367 = vmatpush3.bf16.msra.mxu1 %v3324_v49  ;;  %v1383_v16 = vmax.f32 %v1367_v63, 0.0 }
 0x3e5   : > { %v1386_v19 = vmax.f32 %v1370_v43, 0.0  ;;  %2368 = vmatprep.subr.bf16.mxu1 %v3322_v62 }
 0x3e6   : > { %v1384_v54 = vmax.f32 %v1368_v0, 0.0  ;;  %v2270_v56 = vpop.f32.mrb[24].mxu0  ;;  %v3328_v0 = vld [vmem:[#allocation16_spill] sm:$0xff] }
 0x3e7   : > { %v1398_v21 = vpack.c.bf16 %v1386_v19, %v1385_v59  ;;  %v1353_v24 = vmul.f32 %v2270_v56, %v3121_v12  ;;  %v1308_v60 = vpop.f32.mrb[25].mxu0 }
 0x3e8   : > { %v1397_v30 = vpack.c.bf16 %v1384_v54, %v1383_v16  ;;  %v1351_v45 = vmul.f32 %v3121_v12, %v1308_v60  ;;  %2370 = vmatpush3.bf16.msra.mxu1 %v3325_v32  ;;  %v2271_v53 = vpop.f32.mrb[26].mxu0  ;;  %v3330_v60 = vld [vmem:[#allocation18_spill] sm:$0xff] }
 0x3e9   : > { %v1373_v8 = vadd.f32 %v3124_v31, %v1353_v24  ;;  %v1354_v58 = vmul.f32 %v2271_v53, %v3121_v12  ;;  %v1311_v35 = vpop.f32.mrb[27].mxu0  ;;  %2371 = vmatprep.subr.bf16.mxu1 %v3322_v62  ;;  %v3333_v53 = vld [vmem:[#allocation20_spill] sm:$0xff] }
 0x3ea   : > { %v1371_v11 = vadd.f32 %v3124_v31, %v1351_v45  ;;  %v1352_v25 = vmul.f32 %v3121_v12, %v1311_v35  ;;  %2284 = vmatprep.mubr.msk.bf16.mxu1 %vm687_vm0, %v1397_v30  ;;  %v3332_v45 = vld [vmem:[#allocation19_spill] sm:$0xff] }
 0x3eb   : > { %v1374_v23 = vadd.f32 %v3124_v31, %v1354_v58  ;;  %2285 = vmatmul.mubr.msk.bf16.gmra.mrb[24].mxu1 %vm687_vm0, %v1398_v21  ;;  %v1389_v38 = vmax.f32 %v1373_v8, 0.0  ;;  %v3329_v21 = vld [vmem:[#allocation17_spill] sm:$0xff] }
 0x3ec   : > { %v1372_v28 = vadd.f32 %v3124_v31, %v1352_v25  ;;  %2373 = vmatpush3.bf16.msra.mxu1 %v3326_v42  ;;  %v1387_v29 = vmax.f32 %v1371_v11, 0.0 }
 0x3ed   : > { %v1390_v44 = vmax.f32 %v1374_v23, 0.0  ;;  %2374 = vmatprep.subr.bf16.mxu1 %v3322_v62 }
 0x3ee   : > { %v1388_v47 = vmax.f32 %v1372_v28, 0.0  ;;  %v2274_v46 = vpop.f32.mrb[28].mxu0 }
 0x3ef   : > { %v1400_v34 = vpack.c.bf16 %v1390_v44, %v1389_v38  ;;  %v1357_v1 = vmul.f32 %v2274_v46, %v3121_v12  ;;  %v1324_v6 = vpop.f32.mrb[29].mxu0 }
 0x3f0   : > { %v1399_v17 = vpack.c.bf16 %v1388_v47, %v1387_v29  ;;  %2376 = vmatpush3.bf16.msra.mxu1 %v3327_v39  ;;  %v1355_v52 = vmul.f32 %v3121_v12, %v1324_v6  ;;  %v2275_v9 = vpop.f32.mrb[30].mxu0 }
 0x3f1   : > { %2377 = vmatprep.subr.bf16.mxu1 %v3322_v62  ;;  %v1377_v10 = vadd.f32 %v3124_v31, %v1357_v1  ;;  %v1358_v51 = vmul.f32 %v2275_v9, %v3121_v12  ;;  %v1327_v14 = vpop.f32.mrb[31].mxu0  ;;  %v2551_v9 = vld [vmem:[%s3264_s8] sm:$0xff] }
 0x3f2   : > { %2288 = vmatprep.mubr.msk.bf16.mxu1 %vm687_vm0, %v1399_v17  ;;  %v1375_v63 = vadd.f32 %v3124_v31, %v1355_v52  ;;  %v1356_v2 = vmul.f32 %v3121_v12, %v1327_v14  ;;  %v1594_v12 = vadd.f32 %v1593_v55, %v1592_v57  ;;  %v1538_v52 = vsub.s32 6, %v3323_v20 }
 0x3f3   : > { %2289 = vmatmul.mubr.msk.bf16.gmra.mrb[28].mxu1 %vm687_vm0, %v1400_v34  ;;  %v1378_v43 = vadd.f32 %v3124_v31, %v1358_v51  ;;  %v1393_v59 = vmax.f32 %v1377_v10, 0.0  ;;  %v1558_v10 = vsub.s32 7, %v3323_v20 }
 0x3f4   : > { %2379 = vmatpush3.bf16.msra.mxu1 %v3328_v0  ;;  %v1376_v49 = vadd.f32 %v3124_v31, %v1356_v2  ;;  %v1391_v16 = vmax.f32 %v1375_v63, 0.0  ;;  %v3331_v31 = vmov 0.0   ;;  %v1595_v30 = vrot.slane %v1594_v12, 1 }
 0x3f5   : > { %2380 = vmatprep.subr.bf16.mxu1 %v3322_v62  ;;  %v1394_v19 = vmax.f32 %v1378_v43, 0.0  ;;  %v1539_v57 = vrot.slane %v2551_v9, %v1538_v52  ;;  %v1559_v14 = vrot.slane %v2551_v9, %v1558_v10 }
 0x3f6   : > { %v1392_v54 = vmax.f32 %v1376_v49, 0.0  ;;  %v1596_v32 = vadd.f32 %v1595_v30, %v1594_v12 }
 0x3f7   : > { %v1402_v56 = vpack.c.bf16 %v1394_v19, %v1393_v59 }
 0x3f8   : > { %2382 = vmatpush3.bf16.msra.mxu1 %v3329_v21  ;;  %v1401_v24 = vpack.c.bf16 %v1392_v54, %v1391_v16 }
 0x3f9   : > { %2383 = vmatprep.subr.bf16.mxu1 %v3322_v62 }
 0x3fa   : > { %2292 = vmatprep.mubr.msk.bf16.mxu1 %vm687_vm0, %v1401_v24 }
 0x3fb   : > { %2293 = vmatmul.mubr.msk.bf16.gmra.mrb[32].mxu1 %vm687_vm0, %v1402_v56 }
 0x3fc   : > { %2385 = vmatpush3.bf16.msra.mxu1 %v3330_v60  ;;  %2328 = vmatprep.mubr.msk.f32.mxu1 %vm2577_vm1, %v3331_v31 }
 0x3fd   : > { %2386 = vmatprep.subr.bf16.mxu1 %v3322_v62 }
 0x400   : > { %2388 = vmatpush3.bf16.msra.mxu1 %v3332_v45 }
 0x401   : > { %2389 = vmatprep.subr.bf16.mxu1 %v3322_v62 }
 0x403   : > { %2329 = vmatmul.mubr.f32.vlgmr.msra.gmra.mrb[36].mxu1 %v1596_v32 }
 0x404   : > { %2391 = vmatpush3.bf16.msra.mxu1 %v3333_v53  ;;  %2335 = vmatprep.mubr.msk.f32.mxu1 %vm2577_vm1, %v3331_v31 }
 0x4b6   : > { %v2282_v8 = vpop.f32.mrb[20].mxu1 }
 0x4b7   : > { %v1473_v58 = vpop.f32.mrb[21].mxu1  ;;  %v1542_v51 = vmul.f32 %v2282_v8, %v1539_v57  ;;  %v3334_v8 = vrot.slane %v2974_v61, 1 }
 0x4b8   : > { %v2283_v35 = vpop.f32.mrb[22].mxu1  ;;  %v1540_v63 = vmul.f32 %v1539_v57, %v1473_v58 }
 0x4b9   : > { %v1476_v11 = vpop.f32.mrb[23].mxu1  ;;  %v1562_v2 = vadd.f32 %v1559_v14, %v1542_v51  ;;  %v1543_v43 = vmul.f32 %v2283_v35, %v1539_v57 }
 0x4ba   : > { %v1541_v0 = vmul.f32 %v1539_v57, %v1476_v11  ;;  %v1560_v54 = vadd.f32 %v1559_v14, %v1540_v63 }
 0x4bb   : > { %v1563_v45 = vadd.f32 %v1559_v14, %v1543_v43 }
 0x4bc   : > { %v1561_v32 = vadd.f32 %v1559_v14, %v1541_v0 }
 0x4be   : > { %v2286_v25 = vpop.f32.mrb[24].mxu1 }
 0x4bf   : > { %v1489_v23 = vpop.f32.mrb[25].mxu1  ;;  %v1546_v49 = vmul.f32 %v2286_v25, %v1539_v57 }
 0x4c0   : > { %v2287_v28 = vpop.f32.mrb[26].mxu1  ;;  %v1544_v55 = vmul.f32 %v1539_v57, %v1489_v23 }
 0x4c1   : > { %v1492_v42 = vpop.f32.mrb[27].mxu1  ;;  %v1547_v59 = vmul.f32 %v2287_v28, %v1539_v57  ;;  %v1566_v53 = vadd.f32 %v1559_v14, %v1546_v49 }
 0x4c2   : > { %v1545_v19 = vmul.f32 %v1539_v57, %v1492_v42  ;;  %v1564_v11 = vadd.f32 %v1559_v14, %v1544_v55 }
 0x4c3   : > { %v1567_v25 = vadd.f32 %v1559_v14, %v1547_v59 }
 0x4c4   : > { %v1565_v23 = vadd.f32 %v1559_v14, %v1545_v19 }
 0x4c6   : > { %v2290_v38 = vpop.f32.mrb[28].mxu1 }
 0x4c7   : > { %v1505_v44 = vpop.f32.mrb[29].mxu1  ;;  %v1550_v16 = vmul.f32 %v2290_v38, %v1539_v57 }
 0x4c8   : > { %v2291_v41 = vpop.f32.mrb[30].mxu1  ;;  %v1548_v56 = vmul.f32 %v1539_v57, %v1505_v44 }
 0x4c9   : > { %v1508_v29 = vpop.f32.mrb[31].mxu1  ;;  %v1551_v21 = vmul.f32 %v2291_v41, %v1539_v57  ;;  %v1570_v28 = vadd.f32 %v1559_v14, %v1550_v16  ;;  %v3335_v41 = vld [vmem:[#allocation11_spill] sm:$0xff] }
 0x4ca   : > { %v1549_v24 = vmul.f32 %v1539_v57, %v1508_v29  ;;  %v1568_v42 = vadd.f32 %v1559_v14, %v1548_v56 }
 0x4cb   : > { %v1571_v38 = vadd.f32 %v1559_v14, %v1551_v21 }
 0x4cc   : > { %v1569_v44 = vadd.f32 %v1559_v14, %v1549_v24 }
 0x4ce   : > { %v2294_v47 = vpop.f32.mrb[32].mxu1 }
 0x4cf   : > { %v1521_v62 = vpop.f32.mrb[33].mxu1  ;;  %v1554_v12 = vmul.f32 %v2294_v47, %v1539_v57 }
 0x4d0   : > { %v2295_v34 = vpop.f32.mrb[34].mxu1  ;;  %v1552_v60 = vmul.f32 %v1539_v57, %v1521_v62 }
 0x4d1   : > { %v1524_v46 = vpop.f32.mrb[35].mxu1  ;;  %v1555_v31 = vmul.f32 %v2295_v34, %v1539_v57  ;;  %v1574_v47 = vadd.f32 %v1559_v14, %v1554_v12 }
 0x4d2   : > { %v1553_v30 = vmul.f32 %v1539_v57, %v1524_v46  ;;  %v1572_v62 = vadd.f32 %v1559_v14, %v1552_v60 }
 0x4d3   : > { %v1575_v34 = vadd.f32 %v1559_v14, %v1555_v31 }
 0x4d4   : > { %v1573_v46 = vadd.f32 %v1559_v14, %v1553_v30 }
 0x4d6   : > { %v1663_v17 = vpop.f32.mrb[36].mxu1 }
 0x4d7   : > { %v1664_v1 = vadd.f32 %v1663_v17, %v2974_v61  ;;  %v2330_v6 = vpop.f32.mrb[37].mxu1 }
 0x4d9   : > { %v1667_v39 = vmax.f32 %v1664_v1, 0.0 }
 0x4db   : > { %2336 = vmatmul.mubr.msk.f32.vlgmr.msra.gmra.mrb[38].mxu1 %vm944_vm2, %v1667_v39 }
 0x5ae   : > { %v1737_v20 = vpop.f32.mrb[38].mxu1 }
 0x5af   : > { %v1738_v58 = vadd.f32 %v1737_v20, %v3334_v8  ;;  %v2337_v35 = vpop.f32.mrb[39].mxu1 }
 0x5b1   : > { %v1744_v29 = vrot.slane %v1738_v58, %v3335_v41 }
 0x5b3   : > { %v1745_v17 = vadd.f32 %v1744_v29, %v1560_v54  ;;  %v1746_v1 = vadd.f32 %v1744_v29, %v1561_v32  ;;  %v1747_v6 = vadd.f32 %v1744_v29, %v1562_v2  ;;  %v1748_v39 = vadd.f32 %v1744_v29, %v1563_v45 }
 0x5b4   : > { %v1749_v61 = vadd.f32 %v1744_v29, %v1564_v11  ;;  %v1750_v52 = vadd.f32 %v1744_v29, %v1565_v23  ;;  %v1751_v9 = vadd.f32 %v1744_v29, %v1566_v53  ;;  %v1752_v57 = vadd.f32 %v1744_v29, %v1567_v25 }
 0x5b5   : > { %v1753_v10 = vadd.f32 %v1744_v29, %v1568_v42  ;;  %v1754_v51 = vadd.f32 %v1744_v29, %v1569_v44  ;;  %v1755_v63 = vadd.f32 %v1744_v29, %v1570_v28  ;;  %v1756_v43 = vadd.f32 %v1744_v29, %v1571_v38 }
 0x5b6   : > { %v1757_v0 = vadd.f32 %v1744_v29, %v1572_v62  ;;  %v1758_v49 = vadd.f32 %v1744_v29, %v1573_v46  ;;  %v1759_v55 = vadd.f32 %v1744_v29, %v1574_v47  ;;  %v1760_v59 = vadd.f32 %v1744_v29, %v1575_v34 }
 0x5b7   : > { %v2037_v19 = vmul.f32 -1.442695, %v1745_v17  ;;  %v2038_v16 = vmul.f32 -1.442695, %v1746_v1  ;;  %v2039_v56 = vmul.f32 -1.442695, %v1747_v6 }
 0x5b8   : > { %v2040_v14 = vmul.f32 -1.442695, %v1748_v39  ;;  %v2041_v54 = vmul.f32 -1.442695, %v1749_v61  ;;  %v2042_v2 = vmul.f32 -1.442695, %v1750_v52 }
 0x5b9   : > { %2487 = vpow2.f32 %v2037_v19  ;;  %v2043_v21 = vmul.f32 -1.442695, %v1751_v9  ;;  %v2044_v24 = vmul.f32 -1.442695, %v1752_v57  ;;  %v2045_v12 = vmul.f32 -1.442695, %v1753_v10 }
 0x5ba   : > { %2489 = vpow2.f32 %v2038_v16  ;;  %v2046_v60 = vmul.f32 -1.442695, %v1754_v51  ;;  %v2047_v31 = vmul.f32 -1.442695, %v1755_v63  ;;  %v2048_v30 = vmul.f32 -1.442695, %v1756_v43 }
 0x5bb   : > { %2491 = vpow2.f32 %v2039_v56  ;;  %v2049_v20 = vmul.f32 -1.442695, %v1757_v0  ;;  %v2050_v45 = vmul.f32 -1.442695, %v1758_v49  ;;  %v2051_v53 = vmul.f32 -1.442695, %v1759_v55 }
 0x5bc   : > { %2493 = vpow2.f32 %v2040_v14  ;;  %v2052_v58 = vmul.f32 -1.442695, %v1760_v59 }
 0x5bd   : > { %2495 = vpow2.f32 %v2041_v54 }
 0x5be   : > { %2497 = vpow2.f32 %v2042_v2 }
 0x5bf   : > { %2499 = vpow2.f32 %v2043_v21 }
 0x5c0   : > { %2501 = vpow2.f32 %v2044_v24  ;;  %v2552_v24 = vld [vmem:[%s2658_s23] sm:$0xff] }
 0x5c1   : > { %2503 = vpow2.f32 %v2045_v12 }
 0x5c2   : > { %2505 = vpow2.f32 %v2046_v60 }
 0x5c3   : > { %v2488_v32 = vpop.eup %2487  ;;  %2507 = vpow2.f32 %v2047_v31  ;;  %v2553_v31 = vld [vmem:[%s2658_s23 + $0x8] sm:$0xff] }
 0x5c4   : > { %v2490_v8 = vpop.eup %2489  ;;  %2509 = vpow2.f32 %v2048_v30  ;;  %v1809_v11 = vadd.f32 1.0, %v2488_v32 }
 0x5c5   : > { %v2492_v35 = vpop.eup %2491  ;;  %2511 = vpow2.f32 %v2049_v20  ;;  %v1810_v23 = vadd.f32 1.0, %v2490_v8  ;;  %v2555_v8 = vld [vmem:[%s2658_s23 + $0x18] sm:$0xff] }
 0x5c6   : > { %v2494_v25 = vpop.eup %2493  ;;  %2513 = vpow2.f32 %v2050_v45  ;;  %v1811_v42 = vadd.f32 1.0, %v2492_v35  ;;  %v2554_v45 = vld [vmem:[%s2658_s23 + $0x10] sm:$0xff] }
 0x5c7   : > { %v2496_v28 = vpop.eup %2495  ;;  %2515 = vpow2.f32 %v2051_v53  ;;  %v1812_v44 = vadd.f32 1.0, %v2494_v25 }
 0x5c8   : > { %v2498_v38 = vpop.eup %2497  ;;  %2517 = vpow2.f32 %v2052_v58  ;;  %v1813_v29 = vadd.f32 1.0, %v2496_v28  ;;  %v2557_v28 = vld [vmem:[%s2658_s23 + $0x28] sm:$0xff] }
 0x5c9   : > { %v2500_v41 = vpop.eup %2499  ;;  %2519 = vrcp.f32 %v1809_v11  ;;  %v1814_v62 = vadd.f32 1.0, %v2498_v38  ;;  %v2556_v11 = vld [vmem:[%s2658_s23 + $0x20] sm:$0xff] }
 0x5ca   : > { %v2502_v47 = vpop.eup %2501  ;;  %2521 = vrcp.f32 %v1810_v23  ;;  %v1815_v46 = vadd.f32 1.0, %v2500_v41 }
 0x5cb   : > { %v2504_v34 = vpop.eup %2503  ;;  %2523 = vrcp.f32 %v1811_v42  ;;  %v1816_v1 = vadd.f32 1.0, %v2502_v47  ;;  %v2559_v47 = vld [vmem:[%s2658_s23 + $0x38] sm:$0xff] }
 0x5cc   : > { %v2506_v17 = vpop.eup %2505  ;;  %2525 = vrcp.f32 %v1812_v44  ;;  %v1817_v39 = vadd.f32 1.0, %v2504_v34  ;;  %v2558_v44 = vld [vmem:[%s2658_s23 + $0x30] sm:$0xff] }
 0x5cd   : > { %v2508_v6 = vpop.eup %2507  ;;  %2527 = vrcp.f32 %v1813_v29  ;;  %v1818_v52 = vadd.f32 1.0, %v2506_v17 }
 0x5ce   : > { %v2510_v61 = vpop.eup %2509  ;;  %2529 = vrcp.f32 %v1814_v62  ;;  %v1819_v57 = vadd.f32 1.0, %v2508_v6  ;;  %v2561_v6 = vld [vmem:[%s2658_s23 + $0x48] sm:$0xff] }
 0x5cf   : > { %v2512_v9 = vpop.eup %2511  ;;  %2531 = vrcp.f32 %v1815_v46  ;;  %v1820_v51 = vadd.f32 1.0, %v2510_v61  ;;  %v2560_v46 = vld [vmem:[%s2658_s23 + $0x40] sm:$0xff] }
 0x5d0   : > { %v2514_v10 = vpop.eup %2513  ;;  %2533 = vrcp.f32 %v1816_v1  ;;  %v1821_v43 = vadd.f32 1.0, %v2512_v9 }
 0x5d1   : > { %v2516_v63 = vpop.eup %2515  ;;  %2535 = vrcp.f32 %v1817_v39  ;;  %v1822_v49 = vadd.f32 1.0, %v2514_v10 }
 0x5d2   : > { %v2518_v0 = vpop.eup %2517  ;;  %2537 = vrcp.f32 %v1818_v52  ;;  %v1823_v59 = vadd.f32 1.0, %v2516_v63  ;;  %v2562_v52 = vld [vmem:[%s2658_s23 + $0x50] sm:$0xff] }
 0x5d3   : > { %v2520_v55 = vpop.eup %2519  ;;  %2539 = vrcp.f32 %v1819_v57  ;;  %v1824_v16 = vadd.f32 1.0, %v2518_v0 }
 0x5d4   : > { %v2522_v19 = vpop.eup %2521  ;;  %2541 = vrcp.f32 %v1820_v51  ;;  %v1857_v56 = vmul.f32 %v2520_v55, %v3015_v15 }
 0x5d5   : > { %v2524_v14 = vpop.eup %2523  ;;  %2543 = vrcp.f32 %v1821_v43  ;;  %v1858_v54 = vmul.f32 %v2522_v19, %v3019_v26  ;;  %v2567_v19 = vld [vmem:[%s2658_s23 + $0x78] sm:$0xff] }
 0x5d6   : > { %v2526_v2 = vpop.eup %2525  ;;  %2545 = vrcp.f32 %v1822_v49  ;;  %v1859_v21 = vmul.f32 %v2524_v14, %v3023_v33  ;;  %v1873_v12 = vadd.f32 %v2552_v24, %v1857_v56  ;;  %v2565_v49 = vld [vmem:[%s2658_s23 + $0x68] sm:$0xff] }
 0x5d7   : > { %v2528_v15 = vpop.eup %2527  ;;  %2547 = vrcp.f32 %v1823_v59  ;;  %v1860_v60 = vmul.f32 %v2526_v2, %v3027_v4  ;;  %v1874_v30 = vadd.f32 %v2553_v31, %v1858_v54  ;;  %v2566_v59 = vld [vmem:[%s2658_s23 + $0x70] sm:$0xff] }
 0x5d8   : > { %v2530_v20 = vpop.eup %2529  ;;  %2549 = vrcp.f32 %v1824_v16  ;;  %v1861_v26 = vmul.f32 %v2528_v15, %v3031_v5  ;;  %v1875_v32 = vadd.f32 %v2554_v45, %v1859_v21  ;;  %1889 = vst [vmem:[%s3204_s10] sm:$0xff] %v1873_v12 }
 0x5d9   : > { %v2532_v33 = vpop.eup %2531  ;;  %v1862_v53 = vmul.f32 %v2530_v20, %v3036_v36  ;;  %v1876_v58 = vadd.f32 %v2555_v8, %v1860_v60  ;;  %1890 = vst [vmem:[%s3204_s10 + $0x8] sm:$0xff] %v1874_v30 }
 0x5da   : > { %v2534_v4 = vpop.eup %2533  ;;  %v1863_v35 = vmul.f32 %v2532_v33, %v3040_v13  ;;  %v1877_v25 = vadd.f32 %v2556_v11, %v1861_v26  ;;  %1891 = vst [vmem:[%s3204_s10 + $0x10] sm:$0xff] %v1875_v32 }
 0x5db   : > { %v2536_v5 = vpop.eup %2535  ;;  %v1864_v23 = vmul.f32 %v2534_v4, %v3045_v18  ;;  %v1878_v42 = vadd.f32 %v2557_v28, %v1862_v53  ;;  %1892 = vst [vmem:[%s3204_s10 + $0x18] sm:$0xff] %v1876_v58 }
 0x5dc   : > { %v2538_v36 = vpop.eup %2537  ;;  %v1865_v38 = vmul.f32 %v2536_v5, %v3049_v22  ;;  %v1879_v41 = vadd.f32 %v2558_v44, %v1863_v35  ;;  %1893 = vst [vmem:[%s3204_s10 + $0x20] sm:$0xff] %v1877_v25 }
 0x5dd   : > { %v2540_v13 = vpop.eup %2539  ;;  %v1866_v29 = vmul.f32 %v2538_v36, %v3055_v27  ;;  %v1880_v62 = vadd.f32 %v2559_v47, %v1864_v23  ;;  %1894 = vst [vmem:[%s3204_s10 + $0x28] sm:$0xff] %v1878_v42 }
 0x5de   : > { %v2542_v18 = vpop.eup %2541  ;;  %v1867_v34 = vmul.f32 %v2540_v13, %v3065_v7  ;;  %v1881_v17 = vadd.f32 %v2560_v46, %v1865_v38  ;;  %1895 = vst [vmem:[%s3204_s10 + $0x30] sm:$0xff] %v1879_v41 }
 0x5df   : > { %v2544_v22 = vpop.eup %2543  ;;  %v1868_v1 = vmul.f32 %v2542_v18, %v3069_v37  ;;  %v1882_v39 = vadd.f32 %v2561_v6, %v1866_v29  ;;  %1896 = vst [vmem:[%s3204_s10 + $0x38] sm:$0xff] %v1880_v62  ;;  %v2563_v37 = vld [vmem:[%s2658_s23 + $0x58] sm:$0xff] }
 0x5e0   : > { %v2546_v27 = vpop.eup %2545  ;;  %v1869_v61 = vmul.f32 %v2544_v22, %v3087_v40  ;;  %v1883_v7 = vadd.f32 %v2562_v52, %v1867_v34  ;;  %1897 = vst [vmem:[%s3204_s10 + $0x40] sm:$0xff] %v1881_v17  ;;  %v2564_v40 = vld [vmem:[%s2658_s23 + $0x60] sm:$0xff] }
 0x5e1   : > { %v2548_v9 = vpop.eup %2547  ;;  %v1870_v57 = vmul.f32 %v2546_v27, %v3091_v50  ;;  %v1884_v10 = vadd.f32 %v2563_v37, %v1868_v1  ;;  %1898 = vst [vmem:[%s3204_s10 + $0x48] sm:$0xff] %v1882_v39 }
 0x5e2   : > { %v2550_v51 = vpop.eup %2549  ;;  %v1871_v63 = vmul.f32 %v2548_v9, %v3096_v48  ;;  %v1885_v43 = vadd.f32 %v2564_v40, %v1869_v61  ;;  %1899 = vst [vmem:[%s3204_s10 + $0x50] sm:$0xff] %v1883_v7 }
 0x5e3   : > { %v1872_v0 = vmul.f32 %v2550_v51, %v3100_v3  ;;  %v1886_v55 = vadd.f32 %v2565_v49, %v1870_v57  ;;  %1900 = vst [vmem:[%s3204_s10 + $0x58] sm:$0xff] %v1884_v10 }
 0x5e4   : > { %v1887_v50 = vadd.f32 %v2566_v59, %v1871_v63  ;;  %1901 = vst [vmem:[%s3204_s10 + $0x60] sm:$0xff] %v1885_v43 }
 0x5e5   : > { %v1888_v16 = vadd.f32 %v2567_v19, %v1872_v0  ;;  %1902 = vst [vmem:[%s3204_s10 + $0x68] sm:$0xff] %v1886_v55 }
 0x5e6   : > { %1903 = vst [vmem:[%s3204_s10 + $0x70] sm:$0xff] %v1887_v50 }
 0x5e7   : > { %1904 = vst [vmem:[%s3204_s10 + $0x78] sm:$0xff] %v1888_v16 }
 0x5e8 PF: > { %s19_s30 = sadd.s32 1, %s2574_s30  }
 0x5e9   : > { %p16_p4 = scmp.ge.s32.totalorder %s19_s30, 4  }
 0x5eb   :  { %18 = sbr.rel (!%p16_p4) target bundleno = 1 (0x1), region = 89 }

</bundles_post_ra>
